<compile_context>
chip_gen: v7x
topology: tpu7x:2x2x1
jax: 0.10.0
libtpu: 0.0.40
codegen_flags: <defaults>
</compile_context>

<pallas_src>
import functools

import jax
import jax.numpy as jnp
from jax.experimental import pallas as pl
from jax.experimental.pallas import tpu as pltpu


def _round_up(v, m):
    return (v + m - 1) // m * m


def _sublane_multiple(*dtypes):
    # Sub-32-bit dtypes pack along sublanes: f32 -> 8, bf16 -> 16, int8/fp8 -> 32.
    return max(32 // min(jnp.dtype(d).itemsize for d in dtypes), 8)


def _convt_kernel(x_ref, w_ref, o_ref):
    # One MXU matmul per grid step: (bm, E) @ (E, K) -> (bm, K).
    # Any dtype promotion happens here, in VMEM (hidden under DMA); the MXU
    # accumulates in f32 regardless of operand dtype.
    o_ref[...] = jnp.dot(
        x_ref[...], w_ref[...], preferred_element_type=jnp.float32
    ).astype(o_ref.dtype)


@functools.partial(jax.jit, static_argnames=("block_m", "min_pallas_rows"))
def convt(x, w, *, block_m=8192, min_pallas_rows=1024):
    """einsum('bne,ek->bnk', x, w) as a single Pallas TPU matmul.

    x: [B, N, E]   (shared-weight per-node projection)
    w: [E, K]
    returns: [B, N, K] in result_type(x, w)
    """
    B, N, E = x.shape
    Ew, K = w.shape
    assert E == Ew, (E, Ew)

    M = B * N
    out_dtype = jnp.result_type(x.dtype, w.dtype)

    # Small-M fast path: a one-step pallas_call is pure dispatch + pipeline
    # prologue/epilogue overhead; XLA's fused einsum is at least as fast.
    if M <= min_pallas_rows:
        return jnp.einsum(
            "bne,ek->bnk", x, w, preferred_element_type=jnp.float32
        ).astype(out_dtype)

    # Native dtypes straight into pallas_call — no wrapper astype / pad passes.
    x2 = x.reshape(M, E)

    sub = _sublane_multiple(x.dtype, out_dtype)
    if M <= block_m:
        bm = M                                  # one full-extent block
    else:
        bm = _round_up(min(block_m, M), sub)    # sublane-aligned row tile
    grid = pl.cdiv(M, bm)                       # ragged tail masked by Pallas

    cost = pl.CostEstimate(
        flops=2 * M * E * K,
        transcendentals=0,
        bytes_accessed=(
            M * E * jnp.dtype(x.dtype).itemsize
            + E * K * jnp.dtype(w.dtype).itemsize
            + M * K * jnp.dtype(out_dtype).itemsize
        ),
    )

    out = pl.pallas_call(
        _convt_kernel,
        out_shape=jax.ShapeDtypeStruct((M, K), out_dtype),
        grid=(grid,),
        in_specs=[
            pl.BlockSpec((bm, E), lambda i: (i, 0)),
            pl.BlockSpec((E, K), lambda i: (0, 0)),   # weight resident across grid
        ],
        out_specs=pl.BlockSpec((bm, K), lambda i: (i, 0)),
        compiler_params=pltpu.CompilerParams(
            # No-op on single-TC v5e/v6e; lets v7x shard the row axis across
            # its two TensorCores when the grid has >= 2 steps.
            dimension_semantics=("parallel",),
        ),
        cost_estimate=cost,
    )(x2, w)

    return out.reshape(B, N, K)


if __name__ == "__main__":
    key = jax.random.PRNGKey(0)
    kx, kw, kx2 = jax.random.split(key, 3)

    # DFDGCN-style shapes: x [batch, num_nodes, emb] @ w [emb, hidden].
    B, N, E, K = 4, 512, 48, 32          # M = 2048 -> Pallas path (single block)
    x = jax.random.normal(kx, (B, N, E), jnp.float32)
    w = jax.random.normal(kw, (E, K), jnp.float32)

    out = jax.block_until_ready(convt(x, w))
    assert out.shape == (B, N, K), out.shape
    ref = jnp.einsum("bne,ek->bnk", x, w)
    assert bool(jnp.allclose(out, ref, atol=1e-4, rtol=1e-4)), float(
        jnp.max(jnp.abs(out - ref))
    )
    assert bool(jnp.all(jnp.isfinite(out)))

    # Also exercise the multi-block grid with a ragged (masked) tail:
    # M = 2000 rows, 512-row tiles -> grid of 4 with a 464-row tail block.
    B2, N2 = 4, 500
    xr = jax.random.normal(kx2, (B2, N2, E), jnp.float32)
    out2 = jax.block_until_ready(convt(xr, w, block_m=512))
    ref2 = jnp.einsum("bne,ek->bnk", xr, w)
    assert out2.shape == (B2, N2, K), out2.shape
    assert bool(jnp.allclose(out2, ref2, atol=1e-4, rtol=1e-4)), float(
        jnp.max(jnp.abs(out2 - ref2))
    )

    print("KERNEL_OK")
</pallas_src>

<mosaic_0001>
module attributes {stable_mosaic.version = 11 : i64} {
  func.func @_convt_kernel(%arg0: i32, %arg1: memref<2048x48xf32, #tpu.memory_space<vmem>>, %arg2: memref<48x32xf32, #tpu.memory_space<vmem>>, %arg3: memref<2048x32xf32, #tpu.memory_space<vmem>>) attributes {dimension_semantics = [#tpu.dimension_semantics<parallel>], iteration_bounds = array<i64: 1>, scalar_prefetch = 0 : i64, scratch_operands = 0 : i64, tpu.core_type = #tpu.core_type<tc>, window_params = [{transform_indices = @transform_0, window_bounds = array<i64: 2048, 48>}, {pipeline_mode = #tpu.pipeline_mode<synchronous>, transform_indices = @transform_1, window_bounds = array<i64: 48, 32>}, {transform_indices = @transform_2, window_bounds = array<i64: 2048, 32>}]} {
    %c0 = arith.constant 0 : index
    %c0_0 = arith.constant 0 : index
    %0 = vector.load %arg1[%c0, %c0_0] : memref<2048x48xf32, #tpu.memory_space<vmem>>, vector<2048x48xf32>
    %c0_1 = arith.constant 0 : index
    %c0_2 = arith.constant 0 : index
    %1 = vector.load %arg2[%c0_1, %c0_2] : memref<48x32xf32, #tpu.memory_space<vmem>>, vector<48x32xf32>
    %cst = arith.constant dense<0.000000e+00> : vector<2048x32xf32>
    %2 = tpu.matmul %0, %1, %cst {dimension_numbers = #tpu.dot_dimension_numbers<[1], [0], [0], [1], [0, 0, 1, 1], [], []>} : vector<2048x48xf32>, vector<48x32xf32>, vector<2048x32xf32> -> vector<2048x32xf32>
    %c0_3 = arith.constant 0 : index
    %c0_4 = arith.constant 0 : index
    %3 = vector.load %arg3[%c0_3, %c0_4] : memref<2048x32xf32, #tpu.memory_space<vmem>>, vector<2048x32xf32>
    tpu.vector_store %arg3[%c0_3, %c0_4], %2 {strides = array<i32>} : memref<2048x32xf32, #tpu.memory_space<vmem>>, vector<2048x32xf32>,
    return
  }
  func.func @transform_0(%arg0: i32) -> (i32, i32) {
    %c0_i32 = arith.constant 0 : i32
    %c0_i32_0 = arith.constant 0 : i32
    return %arg0, %c0_i32 : i32, i32
  }
  func.func @transform_1(%arg0: i32) -> (i32, i32) {
    %c0_i32 = arith.constant 0 : i32
    %c0_i32_0 = arith.constant 0 : i32
    %c0_i32_1 = arith.constant 0 : i32
    return %c0_i32, %c0_i32_0 : i32, i32
  }
  func.func @transform_2(%arg0: i32) -> (i32, i32) {
    %c0_i32 = arith.constant 0 : i32
    %c0_i32_0 = arith.constant 0 : i32
    return %arg0, %c0_i32 : i32, i32
  }
}

</mosaic_0001>

<bundles_post_ra>
// kernel: convt.1
= control target key start
LH: loop header
LB: loop body
LE: loop exit
PB: predicated region body
PF: predicated region fallthrough
CT: control target
= control target key end

     0   :  { %vm273_vm0 = vcmask 392192   ;;  %vm2387_vm1 = vcmask 261120   ;;  %s5661_s1 = inlined_call_operand.vmem [shape: f32[48,32], index: 1, kind: input, shape index: {}]   ;;  %s5662_s0 = inlined_call_operand.vmem [shape: f32[2048,48], index: 0, kind: input, shape index: {}]   ;;  %s5663_s2 = inlined_call_operand.vmem [shape: f32[2048,32], index: 2, kind: output, shape index: {}]  }
   0x1   :  { %v267_v0 = vld [vmem:[%s5661_s1] sm:$0xff]  ;;  %v268_v1 = vld [vmem:[%s5661_s1 + $0x8] sm:$0xff]  ;;  %v269_v2 = vld [vmem:[%s5661_s1 + $0x10] sm:$0xff] }
   0x2   :  { %v3562_v3 = vpack.c.bf16 %v268_v1, %v267_v0  ;;  %v270_v4 = vld [vmem:[%s5661_s1 + $0x18] sm:$0xff]  ;;  %v271_v6 = vld [vmem:[%s5661_s1 + $0x20] sm:$0xff]  ;;  %v272_v7 = vld [vmem:[%s5661_s1 + $0x28] sm:$0xff] }
   0x3   :  { %v3566_v5 = vpack.c.bf16 %v270_v4, %v269_v2  ;;  %v11_v8 = vld [vmem:[%s5662_s0] sm:$0xff]  ;;  %v3570_v10 = vpack.c.bf16 %v272_v7, %v271_v6  ;;  %v12_v11 = vld [vmem:[%s5662_s0 + $0x8] sm:$0xff]  ;;  %v13_v13 = vld [vmem:[%s5662_s0 + $0x10] sm:$0xff] }
   0x4   :  { %3563 = vmatprep.subr.bf16.mxu0 %v3562_v3  ;;  %3574 = vmatprep.subr.bf16.mxu1 %v3562_v3  ;;  %v139_v9 = vld [vmem:[%s5662_s0 + $0x400] sm:$0xff]  ;;  %v140_v12 = vld [vmem:[%s5662_s0 + $0x408] sm:$0xff]  ;;  %v141_v14 = vld [vmem:[%s5662_s0 + $0x410] sm:$0xff] }
   0x5   :  { %3565 = vmatpush3.bf16.msra.mxu0 %v3562_v3  ;;  %3577 = vmatpush3.bf16.msra.mxu1 %v3562_v3  ;;  %v14_v15 = vld [vmem:[%s5662_s0 + $0x18] sm:$0xff]  ;;  %v15_v17 = vld [vmem:[%s5662_s0 + $0x20] sm:$0xff]  ;;  %v16_v19 = vld [vmem:[%s5662_s0 + $0x28] sm:$0xff] }
   0x6   :  { %3567 = vmatprep.subr.bf16.mxu0 %v3566_v5  ;;  %3575 = vmatprep.subr.bf16.mxu1 %v3566_v5  ;;  %v142_v16 = vld [vmem:[%s5662_s0 + $0x418] sm:$0xff]  ;;  %v143_v18 = vld [vmem:[%s5662_s0 + $0x420] sm:$0xff]  ;;  %v144_v20 = vld [vmem:[%s5662_s0 + $0x428] sm:$0xff] }
   0x7   :  { %3178 = vmatprep.mubr.msk.f32.mxu0 %vm273_vm0, %v11_v8  ;;  %3370 = vmatprep.mubr.msk.f32.mxu1 %vm273_vm0, %v139_v9  ;;  %v17_v21 = vld [vmem:[%s5662_s0 + $0x30] sm:$0xff]  ;;  %v18_v23 = vld [vmem:[%s5662_s0 + $0x38] sm:$0xff]  ;;  %v19_v25 = vld [vmem:[%s5662_s0 + $0x40] sm:$0xff] }
   0x8   :  { %v145_v22 = vld [vmem:[%s5662_s0 + $0x430] sm:$0xff]  ;;  %v146_v24 = vld [vmem:[%s5662_s0 + $0x438] sm:$0xff]  ;;  %v147_v26 = vld [vmem:[%s5662_s0 + $0x440] sm:$0xff] }
   0x9   :  { %3569 = vmatpush3.bf16.msra.mxu0 %v3566_v5  ;;  %3578 = vmatpush3.bf16.msra.mxu1 %v3566_v5  ;;  %v20_v27 = vld [vmem:[%s5662_s0 + $0x48] sm:$0xff]  ;;  %v21_v29 = vld [vmem:[%s5662_s0 + $0x50] sm:$0xff]  ;;  %v22_v31 = vld [vmem:[%s5662_s0 + $0x58] sm:$0xff] }
   0xa   :  { %3571 = vmatprep.subr.bf16.mxu0 %v3570_v10  ;;  %3576 = vmatprep.subr.bf16.mxu1 %v3570_v10  ;;  %v148_v28 = vld [vmem:[%s5662_s0 + $0x448] sm:$0xff]  ;;  %v149_v30 = vld [vmem:[%s5662_s0 + $0x450] sm:$0xff]  ;;  %v150_v32 = vld [vmem:[%s5662_s0 + $0x458] sm:$0xff] }
   0xb   :  { %v23_v33 = vld [vmem:[%s5662_s0 + $0x60] sm:$0xff]  ;;  %v24_v35 = vld [vmem:[%s5662_s0 + $0x68] sm:$0xff]  ;;  %v25_v37 = vld [vmem:[%s5662_s0 + $0x70] sm:$0xff] }
   0xc   :  { %v151_v34 = vld [vmem:[%s5662_s0 + $0x460] sm:$0xff]  ;;  %v152_v36 = vld [vmem:[%s5662_s0 + $0x468] sm:$0xff]  ;;  %v153_v38 = vld [vmem:[%s5662_s0 + $0x470] sm:$0xff] }
   0xd   :  { %3573 = vmatpush3.bf16.msra.mxu0 %v3570_v10  ;;  %3579 = vmatpush3.bf16.msra.mxu1 %v3570_v10  ;;  %v26_v39 = vld [vmem:[%s5662_s0 + $0x78] sm:$0xff]  ;;  %v27_v41 = vld [vmem:[%s5662_s0 + $0x80] sm:$0xff]  ;;  %v28_v43 = vld [vmem:[%s5662_s0 + $0x88] sm:$0xff] }
   0xe   :  { %v154_v40 = vld [vmem:[%s5662_s0 + $0x478] sm:$0xff]  ;;  %v155_v42 = vld [vmem:[%s5662_s0 + $0x480] sm:$0xff]  ;;  %v156_v44 = vld [vmem:[%s5662_s0 + $0x488] sm:$0xff] }
   0xf   :  { %v29_v45 = vld [vmem:[%s5662_s0 + $0x90] sm:$0xff]  ;;  %v30_v47 = vld [vmem:[%s5662_s0 + $0x98] sm:$0xff]  ;;  %v31_v49 = vld [vmem:[%s5662_s0 + $0xa0] sm:$0xff] }
  0x10   :  { %3179 = vmatmul.mubr.msk.f32.vlgmr.msra.gmra.mrb[0].mxu0 %vm273_vm0, %v12_v11  ;;  %3371 = vmatmul.mubr.msk.f32.vlgmr.msra.gmra.mrb[0].mxu1 %vm273_vm0, %v140_v12  ;;  %v157_v46 = vld [vmem:[%s5662_s0 + $0x490] sm:$0xff]  ;;  %v158_v48 = vld [vmem:[%s5662_s0 + $0x498] sm:$0xff]  ;;  %v159_v50 = vld [vmem:[%s5662_s0 + $0x4a0] sm:$0xff] }
  0x11   :  { %3181 = vmatprep.mubr.msk.f32.mxu0 %vm273_vm0, %v13_v13  ;;  %3373 = vmatprep.mubr.msk.f32.mxu1 %vm273_vm0, %v141_v14  ;;  %v32_v51 = vld [vmem:[%s5662_s0 + $0xa8] sm:$0xff]  ;;  %v33_v53 = vld [vmem:[%s5662_s0 + $0xb0] sm:$0xff]  ;;  %v34_v55 = vld [vmem:[%s5662_s0 + $0xb8] sm:$0xff] }
  0x12   :  { %v160_v52 = vld [vmem:[%s5662_s0 + $0x4a8] sm:$0xff]  ;;  %v161_v54 = vld [vmem:[%s5662_s0 + $0x4b0] sm:$0xff]  ;;  %v162_v56 = vld [vmem:[%s5662_s0 + $0x4b8] sm:$0xff] }
  0x13   :  { %v35_v57 = vld [vmem:[%s5662_s0 + $0xc0] sm:$0xff]  ;;  %v36_v59 = vld [vmem:[%s5662_s0 + $0xc8] sm:$0xff]  ;;  %v37_v61 = vld [vmem:[%s5662_s0 + $0xd0] sm:$0xff] }
  0x14   :  { %3182 = vmatmul.mubr.msk.f32.gmra.mrb[2].mxu0 %vm273_vm0, %v14_v15  ;;  %3374 = vmatmul.mubr.msk.f32.gmra.mrb[2].mxu1 %vm273_vm0, %v142_v16  ;;  %v163_v58 = vld [vmem:[%s5662_s0 + $0x4c0] sm:$0xff]  ;;  %v164_v60 = vld [vmem:[%s5662_s0 + $0x4c8] sm:$0xff]  ;;  %v165_v62 = vld [vmem:[%s5662_s0 + $0x4d0] sm:$0xff] }
  0x15   :  { %3184 = vmatprep.mubr.msk.f32.mxu0 %vm273_vm0, %v15_v17  ;;  %3376 = vmatprep.mubr.msk.f32.mxu1 %vm273_vm0, %v143_v18  ;;  %v38_v63 = vld [vmem:[%s5662_s0 + $0xd8] sm:$0xff]  ;;  %v39_v1 = vld [vmem:[%s5662_s0 + $0xe0] sm:$0xff]  ;;  %v40_v3 = vld [vmem:[%s5662_s0 + $0xe8] sm:$0xff] }
  0x16   :  { %v166_v0 = vld [vmem:[%s5662_s0 + $0x4d8] sm:$0xff]  ;;  %v167_v2 = vld [vmem:[%s5662_s0 + $0x4e0] sm:$0xff]  ;;  %v168_v4 = vld [vmem:[%s5662_s0 + $0x4e8] sm:$0xff] }
  0x17   :  { %v41_v5 = vld [vmem:[%s5662_s0 + $0xf0] sm:$0xff]  ;;  %v42_v7 = vld [vmem:[%s5662_s0 + $0xf8] sm:$0xff]  ;;  %v43_v9 = vld [vmem:[%s5662_s0 + $0x100] sm:$0xff] }
  0x18   :  { %3185 = vmatmul.mubr.msk.f32.gmra.mrb[4].mxu0 %vm273_vm0, %v16_v19  ;;  %3377 = vmatmul.mubr.msk.f32.gmra.mrb[4].mxu1 %vm273_vm0, %v144_v20  ;;  %v169_v6 = vld [vmem:[%s5662_s0 + $0x4f0] sm:$0xff]  ;;  %v170_v8 = vld [vmem:[%s5662_s0 + $0x4f8] sm:$0xff]  ;;  %v171_v10 = vld [vmem:[%s5662_s0 + $0x500] sm:$0xff] }
  0x19   :  { %3187 = vmatprep.mubr.msk.f32.mxu0 %vm273_vm0, %v17_v21  ;;  %3379 = vmatprep.mubr.msk.f32.mxu1 %vm273_vm0, %v145_v22  ;;  %v44_v11 = vld [vmem:[%s5662_s0 + $0x108] sm:$0xff]  ;;  %v45_v13 = vld [vmem:[%s5662_s0 + $0x110] sm:$0xff]  ;;  %v46_v15 = vld [vmem:[%s5662_s0 + $0x118] sm:$0xff] }
  0x1a   :  { %v172_v12 = vld [vmem:[%s5662_s0 + $0x508] sm:$0xff]  ;;  %v173_v14 = vld [vmem:[%s5662_s0 + $0x510] sm:$0xff]  ;;  %v174_v16 = vld [vmem:[%s5662_s0 + $0x518] sm:$0xff] }
  0x1b   :  { %v47_v17 = vld [vmem:[%s5662_s0 + $0x120] sm:$0xff]  ;;  %v48_v19 = vld [vmem:[%s5662_s0 + $0x128] sm:$0xff]  ;;  %v49_v21 = vld [vmem:[%s5662_s0 + $0x130] sm:$0xff] }
  0x1c   :  { %3188 = vmatmul.mubr.msk.f32.gmra.mrb[6].mxu0 %vm273_vm0, %v18_v23  ;;  %3380 = vmatmul.mubr.msk.f32.gmra.mrb[6].mxu1 %vm273_vm0, %v146_v24  ;;  %v175_v18 = vld [vmem:[%s5662_s0 + $0x520] sm:$0xff]  ;;  %v176_v20 = vld [vmem:[%s5662_s0 + $0x528] sm:$0xff]  ;;  %v177_v22 = vld [vmem:[%s5662_s0 + $0x530] sm:$0xff] }
  0x1d   :  { %3190 = vmatprep.mubr.msk.f32.mxu0 %vm273_vm0, %v19_v25  ;;  %3382 = vmatprep.mubr.msk.f32.mxu1 %vm273_vm0, %v147_v26  ;;  %v50_v23 = vld [vmem:[%s5662_s0 + $0x138] sm:$0xff]  ;;  %v51_v25 = vld [vmem:[%s5662_s0 + $0x140] sm:$0xff] }
  0x1e   :  { %v178_v24 = vld [vmem:[%s5662_s0 + $0x538] sm:$0xff]  ;;  %v179_v26 = vld [vmem:[%s5662_s0 + $0x540] sm:$0xff] }
  0x20   :  { %3191 = vmatmul.mubr.msk.f32.gmra.mrb[8].mxu0 %vm273_vm0, %v20_v27  ;;  %3383 = vmatmul.mubr.msk.f32.gmra.mrb[8].mxu1 %vm273_vm0, %v148_v28  ;;  %v52_v27 = vld [vmem:[%s5662_s0 + $0x148] sm:$0xff] }
  0x21   :  { %3193 = vmatprep.mubr.msk.f32.mxu0 %vm273_vm0, %v21_v29  ;;  %3385 = vmatprep.mubr.msk.f32.mxu1 %vm273_vm0, %v149_v30  ;;  %v180_v28 = vld [vmem:[%s5662_s0 + $0x548] sm:$0xff]  ;;  %v53_v29 = vld [vmem:[%s5662_s0 + $0x150] sm:$0xff] }
  0x22   :  { %v181_v30 = vld [vmem:[%s5662_s0 + $0x550] sm:$0xff] }
  0x24   :  { %3194 = vmatmul.mubr.msk.f32.gmra.mrb[10].mxu0 %vm273_vm0, %v22_v31  ;;  %3386 = vmatmul.mubr.msk.f32.gmra.mrb[10].mxu1 %vm273_vm0, %v150_v32  ;;  %v54_v31 = vld [vmem:[%s5662_s0 + $0x158] sm:$0xff] }
  0x25   :  { %3196 = vmatprep.mubr.msk.f32.mxu0 %vm273_vm0, %v23_v33  ;;  %3388 = vmatprep.mubr.msk.f32.mxu1 %vm273_vm0, %v151_v34  ;;  %v182_v32 = vld [vmem:[%s5662_s0 + $0x558] sm:$0xff]  ;;  %v55_v33 = vld [vmem:[%s5662_s0 + $0x160] sm:$0xff] }
  0x26   :  { %v183_v34 = vld [vmem:[%s5662_s0 + $0x560] sm:$0xff] }
  0x28   :  { %3197 = vmatmul.mubr.msk.f32.gmra.mrb[12].mxu0 %vm273_vm0, %v24_v35  ;;  %3389 = vmatmul.mubr.msk.f32.gmra.mrb[12].mxu1 %vm273_vm0, %v152_v36  ;;  %v56_v35 = vld [vmem:[%s5662_s0 + $0x168] sm:$0xff] }
  0x29   :  { %3199 = vmatprep.mubr.msk.f32.mxu0 %vm273_vm0, %v25_v37  ;;  %3391 = vmatprep.mubr.msk.f32.mxu1 %vm273_vm0, %v153_v38  ;;  %v184_v36 = vld [vmem:[%s5662_s0 + $0x568] sm:$0xff]  ;;  %v57_v37 = vld [vmem:[%s5662_s0 + $0x170] sm:$0xff] }
  0x2a   :  { %v185_v38 = vld [vmem:[%s5662_s0 + $0x570] sm:$0xff] }
  0x2c   :  { %3200 = vmatmul.mubr.msk.f32.gmra.mrb[14].mxu0 %vm273_vm0, %v26_v39  ;;  %3392 = vmatmul.mubr.msk.f32.gmra.mrb[14].mxu1 %vm273_vm0, %v154_v40  ;;  %v58_v39 = vld [vmem:[%s5662_s0 + $0x178] sm:$0xff] }
  0x2d   :  { %3202 = vmatprep.mubr.msk.f32.mxu0 %vm273_vm0, %v27_v41  ;;  %3394 = vmatprep.mubr.msk.f32.mxu1 %vm273_vm0, %v155_v42  ;;  %v186_v40 = vld [vmem:[%s5662_s0 + $0x578] sm:$0xff]  ;;  %v59_v41 = vld [vmem:[%s5662_s0 + $0x180] sm:$0xff] }
  0x2e   :  { %v187_v42 = vld [vmem:[%s5662_s0 + $0x580] sm:$0xff] }
  0x30   :  { %3203 = vmatmul.mubr.msk.f32.gmra.mrb[16].mxu0 %vm273_vm0, %v28_v43  ;;  %3395 = vmatmul.mubr.msk.f32.gmra.mrb[16].mxu1 %vm273_vm0, %v156_v44  ;;  %v60_v43 = vld [vmem:[%s5662_s0 + $0x188] sm:$0xff] }
  0x31   :  { %3205 = vmatprep.mubr.msk.f32.mxu0 %vm273_vm0, %v29_v45  ;;  %3397 = vmatprep.mubr.msk.f32.mxu1 %vm273_vm0, %v157_v46  ;;  %v188_v44 = vld [vmem:[%s5662_s0 + $0x588] sm:$0xff]  ;;  %v61_v45 = vld [vmem:[%s5662_s0 + $0x190] sm:$0xff] }
  0x32   :  { %v189_v46 = vld [vmem:[%s5662_s0 + $0x590] sm:$0xff] }
  0x34   :  { %3206 = vmatmul.mubr.msk.f32.gmra.mrb[18].mxu0 %vm273_vm0, %v30_v47  ;;  %3398 = vmatmul.mubr.msk.f32.gmra.mrb[18].mxu1 %vm273_vm0, %v158_v48  ;;  %v62_v47 = vld [vmem:[%s5662_s0 + $0x198] sm:$0xff] }
  0x35   :  { %3208 = vmatprep.mubr.msk.f32.mxu0 %vm273_vm0, %v31_v49  ;;  %3400 = vmatprep.mubr.msk.f32.mxu1 %vm273_vm0, %v159_v50  ;;  %v190_v48 = vld [vmem:[%s5662_s0 + $0x598] sm:$0xff]  ;;  %v63_v49 = vld [vmem:[%s5662_s0 + $0x1a0] sm:$0xff] }
  0x36   :  { %v191_v50 = vld [vmem:[%s5662_s0 + $0x5a0] sm:$0xff] }
  0x38   :  { %3209 = vmatmul.mubr.msk.f32.gmra.mrb[20].mxu0 %vm273_vm0, %v32_v51  ;;  %3401 = vmatmul.mubr.msk.f32.gmra.mrb[20].mxu1 %vm273_vm0, %v160_v52  ;;  %v64_v51 = vld [vmem:[%s5662_s0 + $0x1a8] sm:$0xff] }
  0x39   :  { %3211 = vmatprep.mubr.msk.f32.mxu0 %vm273_vm0, %v33_v53  ;;  %3403 = vmatprep.mubr.msk.f32.mxu1 %vm273_vm0, %v161_v54  ;;  %v192_v52 = vld [vmem:[%s5662_s0 + $0x5a8] sm:$0xff]  ;;  %v65_v53 = vld [vmem:[%s5662_s0 + $0x1b0] sm:$0xff] }
  0x3a   :  { %v193_v54 = vld [vmem:[%s5662_s0 + $0x5b0] sm:$0xff] }
  0x3c   :  { %3212 = vmatmul.mubr.msk.f32.gmra.mrb[22].mxu0 %vm273_vm0, %v34_v55  ;;  %3404 = vmatmul.mubr.msk.f32.gmra.mrb[22].mxu1 %vm273_vm0, %v162_v56  ;;  %v66_v55 = vld [vmem:[%s5662_s0 + $0x1b8] sm:$0xff] }
  0x3d   :  { %3214 = vmatprep.mubr.msk.f32.mxu0 %vm273_vm0, %v35_v57  ;;  %3406 = vmatprep.mubr.msk.f32.mxu1 %vm273_vm0, %v163_v58  ;;  %v194_v56 = vld [vmem:[%s5662_s0 + $0x5b8] sm:$0xff]  ;;  %v67_v57 = vld [vmem:[%s5662_s0 + $0x1c0] sm:$0xff] }
  0x3e   :  { %v195_v58 = vld [vmem:[%s5662_s0 + $0x5c0] sm:$0xff] }
  0x40   :  { %3215 = vmatmul.mubr.msk.f32.gmra.mrb[24].mxu0 %vm273_vm0, %v36_v59  ;;  %3407 = vmatmul.mubr.msk.f32.gmra.mrb[24].mxu1 %vm273_vm0, %v164_v60  ;;  %v68_v59 = vld [vmem:[%s5662_s0 + $0x1c8] sm:$0xff] }
  0x41   :  { %3217 = vmatprep.mubr.msk.f32.mxu0 %vm273_vm0, %v37_v61  ;;  %3409 = vmatprep.mubr.msk.f32.mxu1 %vm273_vm0, %v165_v62  ;;  %v196_v60 = vld [vmem:[%s5662_s0 + $0x5c8] sm:$0xff]  ;;  %v69_v61 = vld [vmem:[%s5662_s0 + $0x1d0] sm:$0xff] }
  0x42   :  { %v197_v62 = vld [vmem:[%s5662_s0 + $0x5d0] sm:$0xff] }
  0x44   :  { %3218 = vmatmul.mubr.msk.f32.gmra.mrb[26].mxu0 %vm273_vm0, %v38_v63  ;;  %3410 = vmatmul.mubr.msk.f32.gmra.mrb[26].mxu1 %vm273_vm0, %v166_v0  ;;  %v70_v63 = vld [vmem:[%s5662_s0 + $0x1d8] sm:$0xff] }
  0x45   :  { %3220 = vmatprep.mubr.msk.f32.mxu0 %vm273_vm0, %v39_v1  ;;  %3412 = vmatprep.mubr.msk.f32.mxu1 %vm273_vm0, %v167_v2  ;;  %v198_v0 = vld [vmem:[%s5662_s0 + $0x5d8] sm:$0xff]  ;;  %v71_v1 = vld [vmem:[%s5662_s0 + $0x1e0] sm:$0xff] }
  0x46   :  { %v199_v2 = vld [vmem:[%s5662_s0 + $0x5e0] sm:$0xff] }
  0x48   :  { %3221 = vmatmul.mubr.msk.f32.gmra.mrb[28].mxu0 %vm273_vm0, %v40_v3  ;;  %3413 = vmatmul.mubr.msk.f32.gmra.mrb[28].mxu1 %vm273_vm0, %v168_v4  ;;  %v72_v3 = vld [vmem:[%s5662_s0 + $0x1e8] sm:$0xff] }
  0x49   :  { %3223 = vmatprep.mubr.msk.f32.mxu0 %vm273_vm0, %v41_v5  ;;  %3415 = vmatprep.mubr.msk.f32.mxu1 %vm273_vm0, %v169_v6  ;;  %v200_v4 = vld [vmem:[%s5662_s0 + $0x5e8] sm:$0xff]  ;;  %v73_v5 = vld [vmem:[%s5662_s0 + $0x1f0] sm:$0xff] }
  0x4a   :  { %v201_v6 = vld [vmem:[%s5662_s0 + $0x5f0] sm:$0xff] }
  0x4c   :  { %3224 = vmatmul.mubr.msk.f32.gmra.mrb[30].mxu0 %vm273_vm0, %v42_v7  ;;  %3416 = vmatmul.mubr.msk.f32.gmra.mrb[30].mxu1 %vm273_vm0, %v170_v8  ;;  %v74_v7 = vld [vmem:[%s5662_s0 + $0x1f8] sm:$0xff] }
  0x4d   :  { %3226 = vmatprep.mubr.msk.f32.mxu0 %vm273_vm0, %v43_v9  ;;  %3418 = vmatprep.mubr.msk.f32.mxu1 %vm273_vm0, %v171_v10  ;;  %v202_v8 = vld [vmem:[%s5662_s0 + $0x5f8] sm:$0xff]  ;;  %v75_v9 = vld [vmem:[%s5662_s0 + $0x200] sm:$0xff] }
  0x4e   :  { %v203_v10 = vld [vmem:[%s5662_s0 + $0x600] sm:$0xff] }
  0x50   :  { %3227 = vmatmul.mubr.msk.f32.gmra.mrb[32].mxu0 %vm273_vm0, %v44_v11  ;;  %3419 = vmatmul.mubr.msk.f32.gmra.mrb[32].mxu1 %vm273_vm0, %v172_v12  ;;  %v76_v11 = vld [vmem:[%s5662_s0 + $0x208] sm:$0xff] }
  0x51   :  { %3229 = vmatprep.mubr.msk.f32.mxu0 %vm273_vm0, %v45_v13  ;;  %3421 = vmatprep.mubr.msk.f32.mxu1 %vm273_vm0, %v173_v14  ;;  %v204_v12 = vld [vmem:[%s5662_s0 + $0x608] sm:$0xff]  ;;  %v77_v13 = vld [vmem:[%s5662_s0 + $0x210] sm:$0xff] }
  0x52   :  { %v205_v14 = vld [vmem:[%s5662_s0 + $0x610] sm:$0xff] }
  0x54   :  { %3230 = vmatmul.mubr.msk.f32.gmra.mrb[34].mxu0 %vm273_vm0, %v46_v15  ;;  %3422 = vmatmul.mubr.msk.f32.gmra.mrb[34].mxu1 %vm273_vm0, %v174_v16  ;;  %v78_v15 = vld [vmem:[%s5662_s0 + $0x218] sm:$0xff] }
  0x55   :  { %3232 = vmatprep.mubr.msk.f32.mxu0 %vm273_vm0, %v47_v17  ;;  %3424 = vmatprep.mubr.msk.f32.mxu1 %vm273_vm0, %v175_v18  ;;  %v206_v16 = vld [vmem:[%s5662_s0 + $0x618] sm:$0xff]  ;;  %v79_v17 = vld [vmem:[%s5662_s0 + $0x220] sm:$0xff] }
  0x56   :  { %v207_v18 = vld [vmem:[%s5662_s0 + $0x620] sm:$0xff] }
  0x58   :  { %3233 = vmatmul.mubr.msk.f32.gmra.mrb[36].mxu0 %vm273_vm0, %v48_v19  ;;  %3425 = vmatmul.mubr.msk.f32.gmra.mrb[36].mxu1 %vm273_vm0, %v176_v20  ;;  %v80_v19 = vld [vmem:[%s5662_s0 + $0x228] sm:$0xff] }
  0x59   :  { %3235 = vmatprep.mubr.msk.f32.mxu0 %vm273_vm0, %v49_v21  ;;  %3427 = vmatprep.mubr.msk.f32.mxu1 %vm273_vm0, %v177_v22  ;;  %v208_v20 = vld [vmem:[%s5662_s0 + $0x628] sm:$0xff]  ;;  %v81_v21 = vld [vmem:[%s5662_s0 + $0x230] sm:$0xff] }
  0x5a   :  { %v209_v22 = vld [vmem:[%s5662_s0 + $0x630] sm:$0xff] }
  0x5c   :  { %3236 = vmatmul.mubr.msk.f32.gmra.mrb[38].mxu0 %vm273_vm0, %v50_v23  ;;  %3428 = vmatmul.mubr.msk.f32.gmra.mrb[38].mxu1 %vm273_vm0, %v178_v24  ;;  %v82_v23 = vld [vmem:[%s5662_s0 + $0x238] sm:$0xff] }
  0x5d   :  { %3238 = vmatprep.mubr.msk.f32.mxu0 %vm273_vm0, %v51_v25  ;;  %3430 = vmatprep.mubr.msk.f32.mxu1 %vm273_vm0, %v179_v26  ;;  %v210_v24 = vld [vmem:[%s5662_s0 + $0x638] sm:$0xff]  ;;  %v83_v25 = vld [vmem:[%s5662_s0 + $0x240] sm:$0xff] }
  0x5e   :  { %v211_v26 = vld [vmem:[%s5662_s0 + $0x640] sm:$0xff] }
  0x60   :  { %3239 = vmatmul.mubr.msk.f32.gmra.mrb[40].mxu0 %vm273_vm0, %v52_v27  ;;  %3431 = vmatmul.mubr.msk.f32.gmra.mrb[40].mxu1 %vm273_vm0, %v180_v28  ;;  %v84_v27 = vld [vmem:[%s5662_s0 + $0x248] sm:$0xff] }
  0x61   :  { %3241 = vmatprep.mubr.msk.f32.mxu0 %vm273_vm0, %v53_v29  ;;  %3433 = vmatprep.mubr.msk.f32.mxu1 %vm273_vm0, %v181_v30  ;;  %v212_v28 = vld [vmem:[%s5662_s0 + $0x648] sm:$0xff]  ;;  %v85_v29 = vld [vmem:[%s5662_s0 + $0x250] sm:$0xff] }
  0x62   :  { %v213_v30 = vld [vmem:[%s5662_s0 + $0x650] sm:$0xff] }
  0x64   :  { %3242 = vmatmul.mubr.msk.f32.gmra.mrb[42].mxu0 %vm273_vm0, %v54_v31  ;;  %3434 = vmatmul.mubr.msk.f32.gmra.mrb[42].mxu1 %vm273_vm0, %v182_v32  ;;  %v86_v31 = vld [vmem:[%s5662_s0 + $0x258] sm:$0xff] }
  0x65   :  { %3244 = vmatprep.mubr.msk.f32.mxu0 %vm273_vm0, %v55_v33  ;;  %3436 = vmatprep.mubr.msk.f32.mxu1 %vm273_vm0, %v183_v34  ;;  %v214_v32 = vld [vmem:[%s5662_s0 + $0x658] sm:$0xff]  ;;  %v87_v33 = vld [vmem:[%s5662_s0 + $0x260] sm:$0xff] }
  0x66   :  { %v215_v34 = vld [vmem:[%s5662_s0 + $0x660] sm:$0xff] }
  0x68   :  { %3245 = vmatmul.mubr.msk.f32.gmra.mrb[44].mxu0 %vm273_vm0, %v56_v35  ;;  %3437 = vmatmul.mubr.msk.f32.gmra.mrb[44].mxu1 %vm273_vm0, %v184_v36  ;;  %v88_v35 = vld [vmem:[%s5662_s0 + $0x268] sm:$0xff] }
  0x69   :  { %3247 = vmatprep.mubr.msk.f32.mxu0 %vm273_vm0, %v57_v37  ;;  %3439 = vmatprep.mubr.msk.f32.mxu1 %vm273_vm0, %v185_v38  ;;  %v216_v36 = vld [vmem:[%s5662_s0 + $0x668] sm:$0xff]  ;;  %v89_v37 = vld [vmem:[%s5662_s0 + $0x270] sm:$0xff] }
  0x6a   :  { %v217_v38 = vld [vmem:[%s5662_s0 + $0x670] sm:$0xff] }
  0x6c   :  { %3248 = vmatmul.mubr.msk.f32.gmra.mrb[46].mxu0 %vm273_vm0, %v58_v39  ;;  %3440 = vmatmul.mubr.msk.f32.gmra.mrb[46].mxu1 %vm273_vm0, %v186_v40  ;;  %v90_v39 = vld [vmem:[%s5662_s0 + $0x278] sm:$0xff] }
  0x6d   :  { %3250 = vmatprep.mubr.msk.f32.mxu0 %vm273_vm0, %v59_v41  ;;  %3442 = vmatprep.mubr.msk.f32.mxu1 %vm273_vm0, %v187_v42  ;;  %v218_v40 = vld [vmem:[%s5662_s0 + $0x678] sm:$0xff]  ;;  %v91_v41 = vld [vmem:[%s5662_s0 + $0x280] sm:$0xff] }
  0x6e   :  { %v219_v42 = vld [vmem:[%s5662_s0 + $0x680] sm:$0xff] }
  0x70   :  { %3251 = vmatmul.mubr.msk.f32.gmra.mrb[48].mxu0 %vm273_vm0, %v60_v43  ;;  %3443 = vmatmul.mubr.msk.f32.gmra.mrb[48].mxu1 %vm273_vm0, %v188_v44  ;;  %v92_v43 = vld [vmem:[%s5662_s0 + $0x288] sm:$0xff] }
  0x71   :  { %3253 = vmatprep.mubr.msk.f32.mxu0 %vm273_vm0, %v61_v45  ;;  %3445 = vmatprep.mubr.msk.f32.mxu1 %vm273_vm0, %v189_v46  ;;  %v220_v44 = vld [vmem:[%s5662_s0 + $0x688] sm:$0xff]  ;;  %v93_v45 = vld [vmem:[%s5662_s0 + $0x290] sm:$0xff] }
  0x72   :  { %v221_v46 = vld [vmem:[%s5662_s0 + $0x690] sm:$0xff] }
  0x74   :  { %3254 = vmatmul.mubr.msk.f32.gmra.mrb[50].mxu0 %vm273_vm0, %v62_v47  ;;  %3446 = vmatmul.mubr.msk.f32.gmra.mrb[50].mxu1 %vm273_vm0, %v190_v48  ;;  %v94_v47 = vld [vmem:[%s5662_s0 + $0x298] sm:$0xff] }
  0x75   :  { %3256 = vmatprep.mubr.msk.f32.mxu0 %vm273_vm0, %v63_v49  ;;  %3448 = vmatprep.mubr.msk.f32.mxu1 %vm273_vm0, %v191_v50  ;;  %v222_v48 = vld [vmem:[%s5662_s0 + $0x698] sm:$0xff]  ;;  %v95_v49 = vld [vmem:[%s5662_s0 + $0x2a0] sm:$0xff] }
  0x76   :  { %v223_v50 = vld [vmem:[%s5662_s0 + $0x6a0] sm:$0xff] }
  0x78   :  { %3257 = vmatmul.mubr.msk.f32.gmra.mrb[52].mxu0 %vm273_vm0, %v64_v51  ;;  %3449 = vmatmul.mubr.msk.f32.gmra.mrb[52].mxu1 %vm273_vm0, %v192_v52  ;;  %v96_v51 = vld [vmem:[%s5662_s0 + $0x2a8] sm:$0xff] }
  0x79   :  { %3259 = vmatprep.mubr.msk.f32.mxu0 %vm273_vm0, %v65_v53  ;;  %3451 = vmatprep.mubr.msk.f32.mxu1 %vm273_vm0, %v193_v54  ;;  %v224_v52 = vld [vmem:[%s5662_s0 + $0x6a8] sm:$0xff]  ;;  %v97_v53 = vld [vmem:[%s5662_s0 + $0x2b0] sm:$0xff] }
  0x7a   :  { %v225_v54 = vld [vmem:[%s5662_s0 + $0x6b0] sm:$0xff] }
  0x7c   :  { %3260 = vmatmul.mubr.msk.f32.gmra.mrb[54].mxu0 %vm273_vm0, %v66_v55  ;;  %3452 = vmatmul.mubr.msk.f32.gmra.mrb[54].mxu1 %vm273_vm0, %v194_v56  ;;  %v98_v55 = vld [vmem:[%s5662_s0 + $0x2b8] sm:$0xff] }
  0x7d   :  { %3262 = vmatprep.mubr.msk.f32.mxu0 %vm273_vm0, %v67_v57  ;;  %3454 = vmatprep.mubr.msk.f32.mxu1 %vm273_vm0, %v195_v58  ;;  %v226_v56 = vld [vmem:[%s5662_s0 + $0x6b8] sm:$0xff]  ;;  %v99_v57 = vld [vmem:[%s5662_s0 + $0x2c0] sm:$0xff] }
  0x7e   :  { %v227_v58 = vld [vmem:[%s5662_s0 + $0x6c0] sm:$0xff] }
  0x80   :  { %3263 = vmatmul.mubr.msk.f32.gmra.mrb[56].mxu0 %vm273_vm0, %v68_v59  ;;  %3455 = vmatmul.mubr.msk.f32.gmra.mrb[56].mxu1 %vm273_vm0, %v196_v60  ;;  %v100_v59 = vld [vmem:[%s5662_s0 + $0x2c8] sm:$0xff] }
  0x81   :  { %3265 = vmatprep.mubr.msk.f32.mxu0 %vm273_vm0, %v69_v61  ;;  %3457 = vmatprep.mubr.msk.f32.mxu1 %vm273_vm0, %v197_v62  ;;  %v228_v60 = vld [vmem:[%s5662_s0 + $0x6c8] sm:$0xff]  ;;  %v101_v61 = vld [vmem:[%s5662_s0 + $0x2d0] sm:$0xff] }
  0x82   :  { %v229_v62 = vld [vmem:[%s5662_s0 + $0x6d0] sm:$0xff] }
  0x84   :  { %3266 = vmatmul.mubr.msk.f32.gmra.mrb[58].mxu0 %vm273_vm0, %v70_v63  ;;  %3458 = vmatmul.mubr.msk.f32.gmra.mrb[58].mxu1 %vm273_vm0, %v198_v0  ;;  %v102_v63 = vld [vmem:[%s5662_s0 + $0x2d8] sm:$0xff] }
  0x85   :  { %3268 = vmatprep.mubr.msk.f32.mxu0 %vm273_vm0, %v71_v1  ;;  %3460 = vmatprep.mubr.msk.f32.mxu1 %vm273_vm0, %v199_v2  ;;  %v230_v0 = vld [vmem:[%s5662_s0 + $0x6d8] sm:$0xff]  ;;  %v103_v1 = vld [vmem:[%s5662_s0 + $0x2e0] sm:$0xff] }
  0x86   :  { %v231_v2 = vld [vmem:[%s5662_s0 + $0x6e0] sm:$0xff] }
  0x88   :  { %3269 = vmatmul.mubr.msk.f32.gmra.mrb[60].mxu0 %vm273_vm0, %v72_v3  ;;  %3461 = vmatmul.mubr.msk.f32.gmra.mrb[60].mxu1 %vm273_vm0, %v200_v4  ;;  %v104_v3 = vld [vmem:[%s5662_s0 + $0x2e8] sm:$0xff] }
  0x89   :  { %3271 = vmatprep.mubr.msk.f32.mxu0 %vm273_vm0, %v73_v5  ;;  %3463 = vmatprep.mubr.msk.f32.mxu1 %vm273_vm0, %v201_v6  ;;  %v232_v4 = vld [vmem:[%s5662_s0 + $0x6e8] sm:$0xff]  ;;  %v105_v5 = vld [vmem:[%s5662_s0 + $0x2f0] sm:$0xff] }
  0x8a   :  { %v233_v6 = vld [vmem:[%s5662_s0 + $0x6f0] sm:$0xff] }
  0x8c   :  { %3272 = vmatmul.mubr.msk.f32.gmra.mrb[62].mxu0 %vm273_vm0, %v74_v7  ;;  %3464 = vmatmul.mubr.msk.f32.gmra.mrb[62].mxu1 %vm273_vm0, %v202_v8  ;;  %v106_v7 = vld [vmem:[%s5662_s0 + $0x2f8] sm:$0xff] }
  0x8d   :  { %3274 = vmatprep.mubr.msk.f32.mxu0 %vm273_vm0, %v75_v9  ;;  %3466 = vmatprep.mubr.msk.f32.mxu1 %vm273_vm0, %v203_v10  ;;  %v234_v8 = vld [vmem:[%s5662_s0 + $0x6f8] sm:$0xff]  ;;  %v107_v9 = vld [vmem:[%s5662_s0 + $0x300] sm:$0xff] }
  0x8e   :  { %v235_v10 = vld [vmem:[%s5662_s0 + $0x700] sm:$0xff] }
  0x90   :  { %3275 = vmatmul.mubr.msk.f32.gmra.mrb[64].mxu0 %vm273_vm0, %v76_v11  ;;  %3467 = vmatmul.mubr.msk.f32.gmra.mrb[64].mxu1 %vm273_vm0, %v204_v12  ;;  %v108_v11 = vld [vmem:[%s5662_s0 + $0x308] sm:$0xff] }
  0x91   :  { %3277 = vmatprep.mubr.msk.f32.mxu0 %vm273_vm0, %v77_v13  ;;  %3469 = vmatprep.mubr.msk.f32.mxu1 %vm273_vm0, %v205_v14  ;;  %v236_v12 = vld [vmem:[%s5662_s0 + $0x708] sm:$0xff]  ;;  %v109_v13 = vld [vmem:[%s5662_s0 + $0x310] sm:$0xff] }
  0x92   :  { %v237_v14 = vld [vmem:[%s5662_s0 + $0x710] sm:$0xff] }
  0x94   :  { %3278 = vmatmul.mubr.msk.f32.gmra.mrb[66].mxu0 %vm273_vm0, %v78_v15  ;;  %3470 = vmatmul.mubr.msk.f32.gmra.mrb[66].mxu1 %vm273_vm0, %v206_v16  ;;  %v110_v15 = vld [vmem:[%s5662_s0 + $0x318] sm:$0xff] }
  0x95   :  { %3280 = vmatprep.mubr.msk.f32.mxu0 %vm273_vm0, %v79_v17  ;;  %3472 = vmatprep.mubr.msk.f32.mxu1 %vm273_vm0, %v207_v18  ;;  %v238_v16 = vld [vmem:[%s5662_s0 + $0x718] sm:$0xff]  ;;  %v111_v17 = vld [vmem:[%s5662_s0 + $0x320] sm:$0xff] }
  0x96   :  { %v239_v18 = vld [vmem:[%s5662_s0 + $0x720] sm:$0xff] }
  0x98   :  { %3281 = vmatmul.mubr.msk.f32.gmra.mrb[68].mxu0 %vm273_vm0, %v80_v19  ;;  %3473 = vmatmul.mubr.msk.f32.gmra.mrb[68].mxu1 %vm273_vm0, %v208_v20  ;;  %v112_v19 = vld [vmem:[%s5662_s0 + $0x328] sm:$0xff] }
  0x99   :  { %3283 = vmatprep.mubr.msk.f32.mxu0 %vm273_vm0, %v81_v21  ;;  %3475 = vmatprep.mubr.msk.f32.mxu1 %vm273_vm0, %v209_v22  ;;  %v240_v20 = vld [vmem:[%s5662_s0 + $0x728] sm:$0xff]  ;;  %v113_v21 = vld [vmem:[%s5662_s0 + $0x330] sm:$0xff] }
  0x9a   :  { %v241_v22 = vld [vmem:[%s5662_s0 + $0x730] sm:$0xff] }
  0x9c   :  { %3284 = vmatmul.mubr.msk.f32.gmra.mrb[70].mxu0 %vm273_vm0, %v82_v23  ;;  %3476 = vmatmul.mubr.msk.f32.gmra.mrb[70].mxu1 %vm273_vm0, %v210_v24  ;;  %v114_v23 = vld [vmem:[%s5662_s0 + $0x338] sm:$0xff] }
  0x9d   :  { %3286 = vmatprep.mubr.msk.f32.mxu0 %vm273_vm0, %v83_v25  ;;  %3478 = vmatprep.mubr.msk.f32.mxu1 %vm273_vm0, %v211_v26  ;;  %v242_v24 = vld [vmem:[%s5662_s0 + $0x738] sm:$0xff]  ;;  %v115_v25 = vld [vmem:[%s5662_s0 + $0x340] sm:$0xff] }
  0x9e   :  { %v243_v26 = vld [vmem:[%s5662_s0 + $0x740] sm:$0xff] }
  0xa0   :  { %3287 = vmatmul.mubr.msk.f32.gmra.mrb[72].mxu0 %vm273_vm0, %v84_v27  ;;  %3479 = vmatmul.mubr.msk.f32.gmra.mrb[72].mxu1 %vm273_vm0, %v212_v28  ;;  %v116_v27 = vld [vmem:[%s5662_s0 + $0x348] sm:$0xff] }
  0xa1   :  { %3289 = vmatprep.mubr.msk.f32.mxu0 %vm273_vm0, %v85_v29  ;;  %3481 = vmatprep.mubr.msk.f32.mxu1 %vm273_vm0, %v213_v30  ;;  %v244_v28 = vld [vmem:[%s5662_s0 + $0x748] sm:$0xff]  ;;  %v117_v29 = vld [vmem:[%s5662_s0 + $0x350] sm:$0xff] }
  0xa2   :  { %v245_v30 = vld [vmem:[%s5662_s0 + $0x750] sm:$0xff] }
  0xa4   :  { %3290 = vmatmul.mubr.msk.f32.gmra.mrb[74].mxu0 %vm273_vm0, %v86_v31  ;;  %3482 = vmatmul.mubr.msk.f32.gmra.mrb[74].mxu1 %vm273_vm0, %v214_v32  ;;  %v118_v31 = vld [vmem:[%s5662_s0 + $0x358] sm:$0xff] }
  0xa5   :  { %3292 = vmatprep.mubr.msk.f32.mxu0 %vm273_vm0, %v87_v33  ;;  %3484 = vmatprep.mubr.msk.f32.mxu1 %vm273_vm0, %v215_v34  ;;  %v246_v32 = vld [vmem:[%s5662_s0 + $0x758] sm:$0xff]  ;;  %v119_v33 = vld [vmem:[%s5662_s0 + $0x360] sm:$0xff] }
  0xa6   :  { %v247_v34 = vld [vmem:[%s5662_s0 + $0x760] sm:$0xff] }
  0xa8   :  { %3293 = vmatmul.mubr.msk.f32.gmra.mrb[76].mxu0 %vm273_vm0, %v88_v35  ;;  %3485 = vmatmul.mubr.msk.f32.gmra.mrb[76].mxu1 %vm273_vm0, %v216_v36 }
  0xa9   :  { %3295 = vmatprep.mubr.msk.f32.mxu0 %vm273_vm0, %v89_v37  ;;  %3487 = vmatprep.mubr.msk.f32.mxu1 %vm273_vm0, %v217_v38 }
  0xac   :  { %3296 = vmatmul.mubr.msk.f32.gmra.mrb[78].mxu0 %vm273_vm0, %v90_v39  ;;  %3488 = vmatmul.mubr.msk.f32.gmra.mrb[78].mxu1 %vm273_vm0, %v218_v40  ;;  %v120_v39 = vld [vmem:[%s5662_s0 + $0x368] sm:$0xff] }
  0xad   :  { %3298 = vmatprep.mubr.msk.f32.mxu0 %vm273_vm0, %v91_v41  ;;  %3490 = vmatprep.mubr.msk.f32.mxu1 %vm273_vm0, %v219_v42  ;;  %v248_v40 = vld [vmem:[%s5662_s0 + $0x768] sm:$0xff]  ;;  %v121_v41 = vld [vmem:[%s5662_s0 + $0x370] sm:$0xff] }
  0xae   :  { %v249_v42 = vld [vmem:[%s5662_s0 + $0x770] sm:$0xff] }
  0xb0   :  { %3299 = vmatmul.mubr.msk.f32.gmra.mrb[80].mxu0 %vm273_vm0, %v92_v43  ;;  %3491 = vmatmul.mubr.msk.f32.gmra.mrb[80].mxu1 %vm273_vm0, %v220_v44 }
  0xb1   :  { %3301 = vmatprep.mubr.msk.f32.mxu0 %vm273_vm0, %v93_v45  ;;  %3493 = vmatprep.mubr.msk.f32.mxu1 %vm273_vm0, %v221_v46 }
  0xb4   :  { %3302 = vmatmul.mubr.msk.f32.gmra.mrb[82].mxu0 %vm273_vm0, %v94_v47  ;;  %3494 = vmatmul.mubr.msk.f32.gmra.mrb[82].mxu1 %vm273_vm0, %v222_v48  ;;  %v122_v47 = vld [vmem:[%s5662_s0 + $0x378] sm:$0xff] }
  0xb5   :  { %3304 = vmatprep.mubr.msk.f32.mxu0 %vm273_vm0, %v95_v49  ;;  %3496 = vmatprep.mubr.msk.f32.mxu1 %vm273_vm0, %v223_v50  ;;  %v250_v48 = vld [vmem:[%s5662_s0 + $0x778] sm:$0xff]  ;;  %v123_v49 = vld [vmem:[%s5662_s0 + $0x380] sm:$0xff] }
  0xb6   :  { %v251_v50 = vld [vmem:[%s5662_s0 + $0x780] sm:$0xff] }
  0xb8   :  { %3305 = vmatmul.mubr.msk.f32.gmra.mrb[84].mxu0 %vm273_vm0, %v96_v51  ;;  %3497 = vmatmul.mubr.msk.f32.gmra.mrb[84].mxu1 %vm273_vm0, %v224_v52 }
  0xb9   :  { %3307 = vmatprep.mubr.msk.f32.mxu0 %vm273_vm0, %v97_v53  ;;  %3499 = vmatprep.mubr.msk.f32.mxu1 %vm273_vm0, %v225_v54 }
  0xbc   :  { %3308 = vmatmul.mubr.msk.f32.gmra.mrb[86].mxu0 %vm273_vm0, %v98_v55  ;;  %3500 = vmatmul.mubr.msk.f32.gmra.mrb[86].mxu1 %vm273_vm0, %v226_v56  ;;  %v124_v55 = vld [vmem:[%s5662_s0 + $0x388] sm:$0xff] }
  0xbd   :  { %3310 = vmatprep.mubr.msk.f32.mxu0 %vm273_vm0, %v99_v57  ;;  %3502 = vmatprep.mubr.msk.f32.mxu1 %vm273_vm0, %v227_v58  ;;  %v252_v56 = vld [vmem:[%s5662_s0 + $0x788] sm:$0xff]  ;;  %v125_v57 = vld [vmem:[%s5662_s0 + $0x390] sm:$0xff] }
  0xbe   :  { %v253_v58 = vld [vmem:[%s5662_s0 + $0x790] sm:$0xff] }
  0xc0   :  { %3311 = vmatmul.mubr.msk.f32.gmra.mrb[88].mxu0 %vm273_vm0, %v100_v59  ;;  %3503 = vmatmul.mubr.msk.f32.gmra.mrb[88].mxu1 %vm273_vm0, %v228_v60 }
  0xc1   :  { %3313 = vmatprep.mubr.msk.f32.mxu0 %vm273_vm0, %v101_v61  ;;  %3505 = vmatprep.mubr.msk.f32.mxu1 %vm273_vm0, %v229_v62 }
  0xc4   :  { %3314 = vmatmul.mubr.msk.f32.gmra.mrb[90].mxu0 %vm273_vm0, %v102_v63  ;;  %3506 = vmatmul.mubr.msk.f32.gmra.mrb[90].mxu1 %vm273_vm0, %v230_v0  ;;  %v126_v63 = vld [vmem:[%s5662_s0 + $0x398] sm:$0xff] }
  0xc5   :  { %3316 = vmatprep.mubr.msk.f32.mxu0 %vm273_vm0, %v103_v1  ;;  %3508 = vmatprep.mubr.msk.f32.mxu1 %vm273_vm0, %v231_v2  ;;  %v254_v0 = vld [vmem:[%s5662_s0 + $0x798] sm:$0xff]  ;;  %v127_v1 = vld [vmem:[%s5662_s0 + $0x3a0] sm:$0xff] }
  0xc6   :  { %v255_v2 = vld [vmem:[%s5662_s0 + $0x7a0] sm:$0xff] }
  0xc8   :  { %3317 = vmatmul.mubr.msk.f32.gmra.mrb[92].mxu0 %vm273_vm0, %v104_v3  ;;  %3509 = vmatmul.mubr.msk.f32.gmra.mrb[92].mxu1 %vm273_vm0, %v232_v4 }
  0xc9   :  { %3319 = vmatprep.mubr.msk.f32.mxu0 %vm273_vm0, %v105_v5  ;;  %3511 = vmatprep.mubr.msk.f32.mxu1 %vm273_vm0, %v233_v6 }
  0xcc   :  { %3320 = vmatmul.mubr.msk.f32.gmra.mrb[94].mxu0 %vm273_vm0, %v106_v7  ;;  %3512 = vmatmul.mubr.msk.f32.gmra.mrb[94].mxu1 %vm273_vm0, %v234_v8  ;;  %v128_v7 = vld [vmem:[%s5662_s0 + $0x3a8] sm:$0xff] }
  0xcd   :  { %3322 = vmatprep.mubr.msk.f32.mxu0 %vm273_vm0, %v107_v9  ;;  %3514 = vmatprep.mubr.msk.f32.mxu1 %vm273_vm0, %v235_v10  ;;  %v256_v8 = vld [vmem:[%s5662_s0 + $0x7a8] sm:$0xff]  ;;  %v129_v9 = vld [vmem:[%s5662_s0 + $0x3b0] sm:$0xff] }
  0xce   :  { %v257_v10 = vld [vmem:[%s5662_s0 + $0x7b0] sm:$0xff] }
  0xd0   :  { %3323 = vmatmul.mubr.msk.f32.gmra.mrb[96].mxu0 %vm273_vm0, %v108_v11  ;;  %3515 = vmatmul.mubr.msk.f32.gmra.mrb[96].mxu1 %vm273_vm0, %v236_v12 }
  0xd1   :  { %3325 = vmatprep.mubr.msk.f32.mxu0 %vm273_vm0, %v109_v13  ;;  %3517 = vmatprep.mubr.msk.f32.mxu1 %vm273_vm0, %v237_v14 }
  0xd4   :  { %3326 = vmatmul.mubr.msk.f32.gmra.mrb[98].mxu0 %vm273_vm0, %v110_v15  ;;  %3518 = vmatmul.mubr.msk.f32.gmra.mrb[98].mxu1 %vm273_vm0, %v238_v16  ;;  %v130_v15 = vld [vmem:[%s5662_s0 + $0x3b8] sm:$0xff] }
  0xd5   :  { %3328 = vmatprep.mubr.msk.f32.mxu0 %vm273_vm0, %v111_v17  ;;  %3520 = vmatprep.mubr.msk.f32.mxu1 %vm273_vm0, %v239_v18  ;;  %v258_v16 = vld [vmem:[%s5662_s0 + $0x7b8] sm:$0xff]  ;;  %v131_v17 = vld [vmem:[%s5662_s0 + $0x3c0] sm:$0xff] }
  0xd6   :  { %v259_v18 = vld [vmem:[%s5662_s0 + $0x7c0] sm:$0xff] }
  0xd8   :  { %3329 = vmatmul.mubr.msk.f32.gmra.mrb[100].mxu0 %vm273_vm0, %v112_v19  ;;  %3521 = vmatmul.mubr.msk.f32.gmra.mrb[100].mxu1 %vm273_vm0, %v240_v20 }
  0xd9   :  { %3331 = vmatprep.mubr.msk.f32.mxu0 %vm273_vm0, %v113_v21  ;;  %3523 = vmatprep.mubr.msk.f32.mxu1 %vm273_vm0, %v241_v22 }
  0xdc   :  { %3332 = vmatmul.mubr.msk.f32.gmra.mrb[102].mxu0 %vm273_vm0, %v114_v23  ;;  %3524 = vmatmul.mubr.msk.f32.gmra.mrb[102].mxu1 %vm273_vm0, %v242_v24  ;;  %v132_v23 = vld [vmem:[%s5662_s0 + $0x3c8] sm:$0xff] }
  0xdd   :  { %3334 = vmatprep.mubr.msk.f32.mxu0 %vm273_vm0, %v115_v25  ;;  %3526 = vmatprep.mubr.msk.f32.mxu1 %vm273_vm0, %v243_v26  ;;  %v260_v24 = vld [vmem:[%s5662_s0 + $0x7c8] sm:$0xff]  ;;  %v133_v25 = vld [vmem:[%s5662_s0 + $0x3d0] sm:$0xff] }
  0xde   :  { %v261_v26 = vld [vmem:[%s5662_s0 + $0x7d0] sm:$0xff] }
  0xe0   :  { %3335 = vmatmul.mubr.msk.f32.gmra.mrb[104].mxu0 %vm273_vm0, %v116_v27  ;;  %3527 = vmatmul.mubr.msk.f32.gmra.mrb[104].mxu1 %vm273_vm0, %v244_v28 }
  0xe1   :  { %3337 = vmatprep.mubr.msk.f32.mxu0 %vm273_vm0, %v117_v29  ;;  %3529 = vmatprep.mubr.msk.f32.mxu1 %vm273_vm0, %v245_v30 }
  0xe3   :  { %v3180_v35 = vpop.f32.mrb[0].mxu0  ;;  %v3372_v36 = vpop.f32.mrb[0].mxu1 }
  0xe4   :  { %2389 = vst.msk [vmem:[%s5663_s2 + $0x8] sm:$0xff] %vm2387_vm1, %v3180_v35  ;;  %2517 = vst.msk [vmem:[%s5663_s2 + $0x408] sm:$0xff] %vm2387_vm1, %v3372_v36  ;;  %v1108_v37 = vpop.f32.mrb[1].mxu0  ;;  %3338 = vmatmul.mubr.msk.f32.gmra.mrb[106].mxu0 %vm273_vm0, %v118_v31  ;;  %v1748_v38 = vpop.f32.mrb[1].mxu1  ;;  %3530 = vmatmul.mubr.msk.f32.gmra.mrb[106].mxu1 %vm273_vm0, %v246_v32  ;;  %v134_v31 = vld [vmem:[%s5662_s0 + $0x3d8] sm:$0xff] }
  0xe5   :  { %2388 = vst.msk [vmem:[%s5663_s2] sm:$0xff] %vm2387_vm1, %v1108_v37  ;;  %2516 = vst.msk [vmem:[%s5663_s2 + $0x400] sm:$0xff] %vm2387_vm1, %v1748_v38  ;;  %3340 = vmatprep.mubr.msk.f32.mxu0 %vm273_vm0, %v119_v33  ;;  %3532 = vmatprep.mubr.msk.f32.mxu1 %vm273_vm0, %v247_v34  ;;  %v262_v32 = vld [vmem:[%s5662_s0 + $0x7d8] sm:$0xff]  ;;  %v135_v33 = vld [vmem:[%s5662_s0 + $0x3e0] sm:$0xff] }
  0xe6   :  { %v263_v34 = vld [vmem:[%s5662_s0 + $0x7e0] sm:$0xff] }
  0xe7   :  { %v3183_v43 = vpop.f32.mrb[2].mxu0  ;;  %v3375_v44 = vpop.f32.mrb[2].mxu1 }
  0xe8   :  { %2391 = vst.msk [vmem:[%s5663_s2 + $0x18] sm:$0xff] %vm2387_vm1, %v3183_v43  ;;  %2519 = vst.msk [vmem:[%s5663_s2 + $0x418] sm:$0xff] %vm2387_vm1, %v3375_v44  ;;  %v1118_v45 = vpop.f32.mrb[3].mxu0  ;;  %3341 = vmatmul.mubr.msk.f32.gmra.mrb[108].mxu0 %vm273_vm0, %v120_v39  ;;  %v1758_v46 = vpop.f32.mrb[3].mxu1  ;;  %3533 = vmatmul.mubr.msk.f32.gmra.mrb[108].mxu1 %vm273_vm0, %v248_v40  ;;  %v136_v39 = vld [vmem:[%s5662_s0 + $0x3e8] sm:$0xff] }
  0xe9   :  { %2390 = vst.msk [vmem:[%s5663_s2 + $0x10] sm:$0xff] %vm2387_vm1, %v1118_v45  ;;  %2518 = vst.msk [vmem:[%s5663_s2 + $0x410] sm:$0xff] %vm2387_vm1, %v1758_v46  ;;  %3343 = vmatprep.mubr.msk.f32.mxu0 %vm273_vm0, %v121_v41  ;;  %3535 = vmatprep.mubr.msk.f32.mxu1 %vm273_vm0, %v249_v42  ;;  %v264_v40 = vld [vmem:[%s5662_s0 + $0x7e8] sm:$0xff]  ;;  %v137_v41 = vld [vmem:[%s5662_s0 + $0x3f0] sm:$0xff] }
  0xea   :  { %v265_v42 = vld [vmem:[%s5662_s0 + $0x7f0] sm:$0xff] }
  0xeb   :  { %v3186_v51 = vpop.f32.mrb[4].mxu0  ;;  %v3378_v52 = vpop.f32.mrb[4].mxu1 }
  0xec   :  { %2393 = vst.msk [vmem:[%s5663_s2 + $0x28] sm:$0xff] %vm2387_vm1, %v3186_v51  ;;  %2521 = vst.msk [vmem:[%s5663_s2 + $0x428] sm:$0xff] %vm2387_vm1, %v3378_v52  ;;  %v1128_v53 = vpop.f32.mrb[5].mxu0  ;;  %3344 = vmatmul.mubr.msk.f32.gmra.mrb[110].mxu0 %vm273_vm0, %v122_v47  ;;  %v1768_v54 = vpop.f32.mrb[5].mxu1  ;;  %3536 = vmatmul.mubr.msk.f32.gmra.mrb[110].mxu1 %vm273_vm0, %v250_v48  ;;  %v138_v47 = vld [vmem:[%s5662_s0 + $0x3f8] sm:$0xff] }
  0xed   :  { %2392 = vst.msk [vmem:[%s5663_s2 + $0x20] sm:$0xff] %vm2387_vm1, %v1128_v53  ;;  %2520 = vst.msk [vmem:[%s5663_s2 + $0x420] sm:$0xff] %vm2387_vm1, %v1768_v54  ;;  %3346 = vmatprep.mubr.msk.f32.mxu0 %vm273_vm0, %v123_v49  ;;  %3538 = vmatprep.mubr.msk.f32.mxu1 %vm273_vm0, %v251_v50  ;;  %v266_v48 = vld [vmem:[%s5662_s0 + $0x7f8] sm:$0xff] }
  0xef   :  { %v3189_v59 = vpop.f32.mrb[6].mxu0  ;;  %v3381_v60 = vpop.f32.mrb[6].mxu1 }
  0xf0   :  { %2395 = vst.msk [vmem:[%s5663_s2 + $0x38] sm:$0xff] %vm2387_vm1, %v3189_v59  ;;  %2523 = vst.msk [vmem:[%s5663_s2 + $0x438] sm:$0xff] %vm2387_vm1, %v3381_v60  ;;  %v1138_v61 = vpop.f32.mrb[7].mxu0  ;;  %3347 = vmatmul.mubr.msk.f32.gmra.mrb[112].mxu0 %vm273_vm0, %v124_v55  ;;  %v1778_v62 = vpop.f32.mrb[7].mxu1  ;;  %3539 = vmatmul.mubr.msk.f32.gmra.mrb[112].mxu1 %vm273_vm0, %v252_v56 }
  0xf1   :  { %2394 = vst.msk [vmem:[%s5663_s2 + $0x30] sm:$0xff] %vm2387_vm1, %v1138_v61  ;;  %2522 = vst.msk [vmem:[%s5663_s2 + $0x430] sm:$0xff] %vm2387_vm1, %v1778_v62  ;;  %3349 = vmatprep.mubr.msk.f32.mxu0 %vm273_vm0, %v125_v57  ;;  %3541 = vmatprep.mubr.msk.f32.mxu1 %vm273_vm0, %v253_v58 }
  0xf3   :  { %v3192_v3 = vpop.f32.mrb[8].mxu0  ;;  %v3384_v4 = vpop.f32.mrb[8].mxu1 }
  0xf4   :  { %2397 = vst.msk [vmem:[%s5663_s2 + $0x48] sm:$0xff] %vm2387_vm1, %v3192_v3  ;;  %2525 = vst.msk [vmem:[%s5663_s2 + $0x448] sm:$0xff] %vm2387_vm1, %v3384_v4  ;;  %v1148_v5 = vpop.f32.mrb[9].mxu0  ;;  %3350 = vmatmul.mubr.msk.f32.gmra.mrb[114].mxu0 %vm273_vm0, %v126_v63  ;;  %v1788_v6 = vpop.f32.mrb[9].mxu1  ;;  %3542 = vmatmul.mubr.msk.f32.gmra.mrb[114].mxu1 %vm273_vm0, %v254_v0 }
  0xf5   :  { %2396 = vst.msk [vmem:[%s5663_s2 + $0x40] sm:$0xff] %vm2387_vm1, %v1148_v5  ;;  %2524 = vst.msk [vmem:[%s5663_s2 + $0x440] sm:$0xff] %vm2387_vm1, %v1788_v6  ;;  %3352 = vmatprep.mubr.msk.f32.mxu0 %vm273_vm0, %v127_v1  ;;  %3544 = vmatprep.mubr.msk.f32.mxu1 %vm273_vm0, %v255_v2 }
  0xf7   :  { %v3195_v11 = vpop.f32.mrb[10].mxu0  ;;  %v3387_v12 = vpop.f32.mrb[10].mxu1 }
  0xf8   :  { %2399 = vst.msk [vmem:[%s5663_s2 + $0x58] sm:$0xff] %vm2387_vm1, %v3195_v11  ;;  %2527 = vst.msk [vmem:[%s5663_s2 + $0x458] sm:$0xff] %vm2387_vm1, %v3387_v12  ;;  %v1158_v13 = vpop.f32.mrb[11].mxu0  ;;  %3353 = vmatmul.mubr.msk.f32.gmra.mrb[116].mxu0 %vm273_vm0, %v128_v7  ;;  %v1798_v14 = vpop.f32.mrb[11].mxu1  ;;  %3545 = vmatmul.mubr.msk.f32.gmra.mrb[116].mxu1 %vm273_vm0, %v256_v8 }
  0xf9   :  { %2398 = vst.msk [vmem:[%s5663_s2 + $0x50] sm:$0xff] %vm2387_vm1, %v1158_v13  ;;  %2526 = vst.msk [vmem:[%s5663_s2 + $0x450] sm:$0xff] %vm2387_vm1, %v1798_v14  ;;  %3355 = vmatprep.mubr.msk.f32.mxu0 %vm273_vm0, %v129_v9  ;;  %3547 = vmatprep.mubr.msk.f32.mxu1 %vm273_vm0, %v257_v10 }
  0xfb   :  { %v3198_v19 = vpop.f32.mrb[12].mxu0  ;;  %v3390_v20 = vpop.f32.mrb[12].mxu1 }
  0xfc   :  { %2401 = vst.msk [vmem:[%s5663_s2 + $0x68] sm:$0xff] %vm2387_vm1, %v3198_v19  ;;  %2529 = vst.msk [vmem:[%s5663_s2 + $0x468] sm:$0xff] %vm2387_vm1, %v3390_v20  ;;  %v1168_v21 = vpop.f32.mrb[13].mxu0  ;;  %3356 = vmatmul.mubr.msk.f32.gmra.mrb[118].mxu0 %vm273_vm0, %v130_v15  ;;  %v1808_v22 = vpop.f32.mrb[13].mxu1  ;;  %3548 = vmatmul.mubr.msk.f32.gmra.mrb[118].mxu1 %vm273_vm0, %v258_v16 }
  0xfd   :  { %2400 = vst.msk [vmem:[%s5663_s2 + $0x60] sm:$0xff] %vm2387_vm1, %v1168_v21  ;;  %2528 = vst.msk [vmem:[%s5663_s2 + $0x460] sm:$0xff] %vm2387_vm1, %v1808_v22  ;;  %3358 = vmatprep.mubr.msk.f32.mxu0 %vm273_vm0, %v131_v17  ;;  %3550 = vmatprep.mubr.msk.f32.mxu1 %vm273_vm0, %v259_v18 }
  0xff   :  { %v3201_v27 = vpop.f32.mrb[14].mxu0  ;;  %v3393_v28 = vpop.f32.mrb[14].mxu1 }
 0x100   :  { %2403 = vst.msk [vmem:[%s5663_s2 + $0x78] sm:$0xff] %vm2387_vm1, %v3201_v27  ;;  %2531 = vst.msk [vmem:[%s5663_s2 + $0x478] sm:$0xff] %vm2387_vm1, %v3393_v28  ;;  %v1178_v29 = vpop.f32.mrb[15].mxu0  ;;  %3359 = vmatmul.mubr.msk.f32.gmra.mrb[120].mxu0 %vm273_vm0, %v132_v23  ;;  %v1818_v30 = vpop.f32.mrb[15].mxu1  ;;  %3551 = vmatmul.mubr.msk.f32.gmra.mrb[120].mxu1 %vm273_vm0, %v260_v24 }
 0x101   :  { %2402 = vst.msk [vmem:[%s5663_s2 + $0x70] sm:$0xff] %vm2387_vm1, %v1178_v29  ;;  %2530 = vst.msk [vmem:[%s5663_s2 + $0x470] sm:$0xff] %vm2387_vm1, %v1818_v30  ;;  %3361 = vmatprep.mubr.msk.f32.mxu0 %vm273_vm0, %v133_v25  ;;  %3553 = vmatprep.mubr.msk.f32.mxu1 %vm273_vm0, %v261_v26 }
 0x103   :  { %v3204_v35 = vpop.f32.mrb[16].mxu0  ;;  %v3396_v36 = vpop.f32.mrb[16].mxu1 }
 0x104   :  { %2405 = vst.msk [vmem:[%s5663_s2 + $0x88] sm:$0xff] %vm2387_vm1, %v3204_v35  ;;  %2533 = vst.msk [vmem:[%s5663_s2 + $0x488] sm:$0xff] %vm2387_vm1, %v3396_v36  ;;  %v1188_v37 = vpop.f32.mrb[17].mxu0  ;;  %3362 = vmatmul.mubr.msk.f32.gmra.mrb[122].mxu0 %vm273_vm0, %v134_v31  ;;  %v1828_v38 = vpop.f32.mrb[17].mxu1  ;;  %3554 = vmatmul.mubr.msk.f32.gmra.mrb[122].mxu1 %vm273_vm0, %v262_v32 }
 0x105   :  { %2404 = vst.msk [vmem:[%s5663_s2 + $0x80] sm:$0xff] %vm2387_vm1, %v1188_v37  ;;  %2532 = vst.msk [vmem:[%s5663_s2 + $0x480] sm:$0xff] %vm2387_vm1, %v1828_v38  ;;  %3364 = vmatprep.mubr.msk.f32.mxu0 %vm273_vm0, %v135_v33  ;;  %3556 = vmatprep.mubr.msk.f32.mxu1 %vm273_vm0, %v263_v34 }
 0x107   :  { %v3207_v43 = vpop.f32.mrb[18].mxu0  ;;  %v3399_v44 = vpop.f32.mrb[18].mxu1 }
 0x108   :  { %2407 = vst.msk [vmem:[%s5663_s2 + $0x98] sm:$0xff] %vm2387_vm1, %v3207_v43  ;;  %2535 = vst.msk [vmem:[%s5663_s2 + $0x498] sm:$0xff] %vm2387_vm1, %v3399_v44  ;;  %v1198_v45 = vpop.f32.mrb[19].mxu0  ;;  %3365 = vmatmul.mubr.msk.f32.gmra.mrb[124].mxu0 %vm273_vm0, %v136_v39  ;;  %v1838_v46 = vpop.f32.mrb[19].mxu1  ;;  %3557 = vmatmul.mubr.msk.f32.gmra.mrb[124].mxu1 %vm273_vm0, %v264_v40 }
 0x109   :  { %2406 = vst.msk [vmem:[%s5663_s2 + $0x90] sm:$0xff] %vm2387_vm1, %v1198_v45  ;;  %2534 = vst.msk [vmem:[%s5663_s2 + $0x490] sm:$0xff] %vm2387_vm1, %v1838_v46  ;;  %3367 = vmatprep.mubr.msk.f32.mxu0 %vm273_vm0, %v137_v41  ;;  %3559 = vmatprep.mubr.msk.f32.mxu1 %vm273_vm0, %v265_v42 }
 0x10b   :  { %v3210_v49 = vpop.f32.mrb[20].mxu0  ;;  %v3402_v50 = vpop.f32.mrb[20].mxu1 }
 0x10c   :  { %2409 = vst.msk [vmem:[%s5663_s2 + $0xa8] sm:$0xff] %vm2387_vm1, %v3210_v49  ;;  %2537 = vst.msk [vmem:[%s5663_s2 + $0x4a8] sm:$0xff] %vm2387_vm1, %v3402_v50  ;;  %v1208_v51 = vpop.f32.mrb[21].mxu0  ;;  %3368 = vmatmul.mubr.msk.f32.gmra.mrb[126].mxu0 %vm273_vm0, %v138_v47  ;;  %v1848_v52 = vpop.f32.mrb[21].mxu1  ;;  %3560 = vmatmul.mubr.msk.f32.gmra.mrb[126].mxu1 %vm273_vm0, %v266_v48 }
 0x10d   :  { %2408 = vst.msk [vmem:[%s5663_s2 + $0xa0] sm:$0xff] %vm2387_vm1, %v1208_v51  ;;  %2536 = vst.msk [vmem:[%s5663_s2 + $0x4a0] sm:$0xff] %vm2387_vm1, %v1848_v52 }
 0x10f   :  { %v3213_v53 = vpop.f32.mrb[22].mxu0  ;;  %v3405_v54 = vpop.f32.mrb[22].mxu1 }
 0x110   :  { %2411 = vst.msk [vmem:[%s5663_s2 + $0xb8] sm:$0xff] %vm2387_vm1, %v3213_v53  ;;  %2539 = vst.msk [vmem:[%s5663_s2 + $0x4b8] sm:$0xff] %vm2387_vm1, %v3405_v54  ;;  %v1218_v55 = vpop.f32.mrb[23].mxu0  ;;  %v1858_v56 = vpop.f32.mrb[23].mxu1 }
 0x111   :  { %2410 = vst.msk [vmem:[%s5663_s2 + $0xb0] sm:$0xff] %vm2387_vm1, %v1218_v55  ;;  %2538 = vst.msk [vmem:[%s5663_s2 + $0x4b0] sm:$0xff] %vm2387_vm1, %v1858_v56 }
 0x113   :  { %v3216_v57 = vpop.f32.mrb[24].mxu0  ;;  %v3408_v58 = vpop.f32.mrb[24].mxu1 }
 0x114   :  { %2413 = vst.msk [vmem:[%s5663_s2 + $0xc8] sm:$0xff] %vm2387_vm1, %v3216_v57  ;;  %2541 = vst.msk [vmem:[%s5663_s2 + $0x4c8] sm:$0xff] %vm2387_vm1, %v3408_v58  ;;  %v1228_v59 = vpop.f32.mrb[25].mxu0  ;;  %v1868_v60 = vpop.f32.mrb[25].mxu1 }
 0x115   :  { %2412 = vst.msk [vmem:[%s5663_s2 + $0xc0] sm:$0xff] %vm2387_vm1, %v1228_v59  ;;  %2540 = vst.msk [vmem:[%s5663_s2 + $0x4c0] sm:$0xff] %vm2387_vm1, %v1868_v60 }
 0x117   :  { %v3219_v61 = vpop.f32.mrb[26].mxu0  ;;  %v3411_v62 = vpop.f32.mrb[26].mxu1 }
 0x118   :  { %2415 = vst.msk [vmem:[%s5663_s2 + $0xd8] sm:$0xff] %vm2387_vm1, %v3219_v61  ;;  %2543 = vst.msk [vmem:[%s5663_s2 + $0x4d8] sm:$0xff] %vm2387_vm1, %v3411_v62  ;;  %v1238_v63 = vpop.f32.mrb[27].mxu0  ;;  %v1878_v0 = vpop.f32.mrb[27].mxu1 }
 0x119   :  { %2414 = vst.msk [vmem:[%s5663_s2 + $0xd0] sm:$0xff] %vm2387_vm1, %v1238_v63  ;;  %2542 = vst.msk [vmem:[%s5663_s2 + $0x4d0] sm:$0xff] %vm2387_vm1, %v1878_v0 }
 0x11b   :  { %v3222_v1 = vpop.f32.mrb[28].mxu0  ;;  %v3414_v2 = vpop.f32.mrb[28].mxu1 }
 0x11c   :  { %2417 = vst.msk [vmem:[%s5663_s2 + $0xe8] sm:$0xff] %vm2387_vm1, %v3222_v1  ;;  %2545 = vst.msk [vmem:[%s5663_s2 + $0x4e8] sm:$0xff] %vm2387_vm1, %v3414_v2  ;;  %v1248_v3 = vpop.f32.mrb[29].mxu0  ;;  %v1888_v4 = vpop.f32.mrb[29].mxu1 }
 0x11d   :  { %2416 = vst.msk [vmem:[%s5663_s2 + $0xe0] sm:$0xff] %vm2387_vm1, %v1248_v3  ;;  %2544 = vst.msk [vmem:[%s5663_s2 + $0x4e0] sm:$0xff] %vm2387_vm1, %v1888_v4 }
 0x11f   :  { %v3225_v5 = vpop.f32.mrb[30].mxu0  ;;  %v3417_v6 = vpop.f32.mrb[30].mxu1 }
 0x120   :  { %2419 = vst.msk [vmem:[%s5663_s2 + $0xf8] sm:$0xff] %vm2387_vm1, %v3225_v5  ;;  %2547 = vst.msk [vmem:[%s5663_s2 + $0x4f8] sm:$0xff] %vm2387_vm1, %v3417_v6  ;;  %v1258_v7 = vpop.f32.mrb[31].mxu0  ;;  %v1898_v8 = vpop.f32.mrb[31].mxu1 }
 0x121   :  { %2418 = vst.msk [vmem:[%s5663_s2 + $0xf0] sm:$0xff] %vm2387_vm1, %v1258_v7  ;;  %2546 = vst.msk [vmem:[%s5663_s2 + $0x4f0] sm:$0xff] %vm2387_vm1, %v1898_v8 }
 0x123   :  { %v3228_v9 = vpop.f32.mrb[32].mxu0  ;;  %v3420_v10 = vpop.f32.mrb[32].mxu1 }
 0x124   :  { %2421 = vst.msk [vmem:[%s5663_s2 + $0x108] sm:$0xff] %vm2387_vm1, %v3228_v9  ;;  %2549 = vst.msk [vmem:[%s5663_s2 + $0x508] sm:$0xff] %vm2387_vm1, %v3420_v10  ;;  %v1268_v11 = vpop.f32.mrb[33].mxu0  ;;  %v1908_v12 = vpop.f32.mrb[33].mxu1 }
 0x125   :  { %2420 = vst.msk [vmem:[%s5663_s2 + $0x100] sm:$0xff] %vm2387_vm1, %v1268_v11  ;;  %2548 = vst.msk [vmem:[%s5663_s2 + $0x500] sm:$0xff] %vm2387_vm1, %v1908_v12 }
 0x127   :  { %v3231_v13 = vpop.f32.mrb[34].mxu0  ;;  %v3423_v14 = vpop.f32.mrb[34].mxu1 }
 0x128   :  { %2423 = vst.msk [vmem:[%s5663_s2 + $0x118] sm:$0xff] %vm2387_vm1, %v3231_v13  ;;  %2551 = vst.msk [vmem:[%s5663_s2 + $0x518] sm:$0xff] %vm2387_vm1, %v3423_v14  ;;  %v1278_v15 = vpop.f32.mrb[35].mxu0  ;;  %v1918_v16 = vpop.f32.mrb[35].mxu1 }
 0x129   :  { %2422 = vst.msk [vmem:[%s5663_s2 + $0x110] sm:$0xff] %vm2387_vm1, %v1278_v15  ;;  %2550 = vst.msk [vmem:[%s5663_s2 + $0x510] sm:$0xff] %vm2387_vm1, %v1918_v16 }
 0x12b   :  { %v3234_v17 = vpop.f32.mrb[36].mxu0  ;;  %v3426_v18 = vpop.f32.mrb[36].mxu1 }
 0x12c   :  { %2425 = vst.msk [vmem:[%s5663_s2 + $0x128] sm:$0xff] %vm2387_vm1, %v3234_v17  ;;  %2553 = vst.msk [vmem:[%s5663_s2 + $0x528] sm:$0xff] %vm2387_vm1, %v3426_v18  ;;  %v1288_v19 = vpop.f32.mrb[37].mxu0  ;;  %v1928_v20 = vpop.f32.mrb[37].mxu1 }
 0x12d   :  { %2424 = vst.msk [vmem:[%s5663_s2 + $0x120] sm:$0xff] %vm2387_vm1, %v1288_v19  ;;  %2552 = vst.msk [vmem:[%s5663_s2 + $0x520] sm:$0xff] %vm2387_vm1, %v1928_v20 }
 0x12f   :  { %v3237_v21 = vpop.f32.mrb[38].mxu0  ;;  %v3429_v22 = vpop.f32.mrb[38].mxu1 }
 0x130   :  { %2427 = vst.msk [vmem:[%s5663_s2 + $0x138] sm:$0xff] %vm2387_vm1, %v3237_v21  ;;  %2555 = vst.msk [vmem:[%s5663_s2 + $0x538] sm:$0xff] %vm2387_vm1, %v3429_v22  ;;  %v1298_v23 = vpop.f32.mrb[39].mxu0  ;;  %v1938_v24 = vpop.f32.mrb[39].mxu1 }
 0x131   :  { %2426 = vst.msk [vmem:[%s5663_s2 + $0x130] sm:$0xff] %vm2387_vm1, %v1298_v23  ;;  %2554 = vst.msk [vmem:[%s5663_s2 + $0x530] sm:$0xff] %vm2387_vm1, %v1938_v24 }
 0x133   :  { %v3240_v25 = vpop.f32.mrb[40].mxu0  ;;  %v3432_v26 = vpop.f32.mrb[40].mxu1 }
 0x134   :  { %2429 = vst.msk [vmem:[%s5663_s2 + $0x148] sm:$0xff] %vm2387_vm1, %v3240_v25  ;;  %2557 = vst.msk [vmem:[%s5663_s2 + $0x548] sm:$0xff] %vm2387_vm1, %v3432_v26  ;;  %v1308_v27 = vpop.f32.mrb[41].mxu0  ;;  %v1948_v28 = vpop.f32.mrb[41].mxu1 }
 0x135   :  { %2428 = vst.msk [vmem:[%s5663_s2 + $0x140] sm:$0xff] %vm2387_vm1, %v1308_v27  ;;  %2556 = vst.msk [vmem:[%s5663_s2 + $0x540] sm:$0xff] %vm2387_vm1, %v1948_v28 }
 0x137   :  { %v3243_v29 = vpop.f32.mrb[42].mxu0  ;;  %v3435_v30 = vpop.f32.mrb[42].mxu1 }
 0x138   :  { %2431 = vst.msk [vmem:[%s5663_s2 + $0x158] sm:$0xff] %vm2387_vm1, %v3243_v29  ;;  %2559 = vst.msk [vmem:[%s5663_s2 + $0x558] sm:$0xff] %vm2387_vm1, %v3435_v30  ;;  %v1318_v31 = vpop.f32.mrb[43].mxu0  ;;  %v1958_v32 = vpop.f32.mrb[43].mxu1 }
 0x139   :  { %2430 = vst.msk [vmem:[%s5663_s2 + $0x150] sm:$0xff] %vm2387_vm1, %v1318_v31  ;;  %2558 = vst.msk [vmem:[%s5663_s2 + $0x550] sm:$0xff] %vm2387_vm1, %v1958_v32 }
 0x13b   :  { %v3246_v33 = vpop.f32.mrb[44].mxu0  ;;  %v3438_v34 = vpop.f32.mrb[44].mxu1 }
 0x13c   :  { %2433 = vst.msk [vmem:[%s5663_s2 + $0x168] sm:$0xff] %vm2387_vm1, %v3246_v33  ;;  %2561 = vst.msk [vmem:[%s5663_s2 + $0x568] sm:$0xff] %vm2387_vm1, %v3438_v34  ;;  %v1328_v35 = vpop.f32.mrb[45].mxu0  ;;  %v1968_v36 = vpop.f32.mrb[45].mxu1 }
 0x13d   :  { %2432 = vst.msk [vmem:[%s5663_s2 + $0x160] sm:$0xff] %vm2387_vm1, %v1328_v35  ;;  %2560 = vst.msk [vmem:[%s5663_s2 + $0x560] sm:$0xff] %vm2387_vm1, %v1968_v36 }
 0x13f   :  { %v3249_v37 = vpop.f32.mrb[46].mxu0  ;;  %v3441_v38 = vpop.f32.mrb[46].mxu1 }
 0x140   :  { %2435 = vst.msk [vmem:[%s5663_s2 + $0x178] sm:$0xff] %vm2387_vm1, %v3249_v37  ;;  %2563 = vst.msk [vmem:[%s5663_s2 + $0x578] sm:$0xff] %vm2387_vm1, %v3441_v38  ;;  %v1338_v39 = vpop.f32.mrb[47].mxu0  ;;  %v1978_v40 = vpop.f32.mrb[47].mxu1 }
 0x141   :  { %2434 = vst.msk [vmem:[%s5663_s2 + $0x170] sm:$0xff] %vm2387_vm1, %v1338_v39  ;;  %2562 = vst.msk [vmem:[%s5663_s2 + $0x570] sm:$0xff] %vm2387_vm1, %v1978_v40 }
 0x143   :  { %v3252_v41 = vpop.f32.mrb[48].mxu0  ;;  %v3444_v42 = vpop.f32.mrb[48].mxu1 }
 0x144   :  { %2437 = vst.msk [vmem:[%s5663_s2 + $0x188] sm:$0xff] %vm2387_vm1, %v3252_v41  ;;  %2565 = vst.msk [vmem:[%s5663_s2 + $0x588] sm:$0xff] %vm2387_vm1, %v3444_v42  ;;  %v1348_v43 = vpop.f32.mrb[49].mxu0  ;;  %v1988_v44 = vpop.f32.mrb[49].mxu1 }
 0x145   :  { %2436 = vst.msk [vmem:[%s5663_s2 + $0x180] sm:$0xff] %vm2387_vm1, %v1348_v43  ;;  %2564 = vst.msk [vmem:[%s5663_s2 + $0x580] sm:$0xff] %vm2387_vm1, %v1988_v44 }
 0x147   :  { %v3255_v45 = vpop.f32.mrb[50].mxu0  ;;  %v3447_v46 = vpop.f32.mrb[50].mxu1 }
 0x148   :  { %2439 = vst.msk [vmem:[%s5663_s2 + $0x198] sm:$0xff] %vm2387_vm1, %v3255_v45  ;;  %2567 = vst.msk [vmem:[%s5663_s2 + $0x598] sm:$0xff] %vm2387_vm1, %v3447_v46  ;;  %v1358_v47 = vpop.f32.mrb[51].mxu0  ;;  %v1998_v48 = vpop.f32.mrb[51].mxu1 }
 0x149   :  { %2438 = vst.msk [vmem:[%s5663_s2 + $0x190] sm:$0xff] %vm2387_vm1, %v1358_v47  ;;  %2566 = vst.msk [vmem:[%s5663_s2 + $0x590] sm:$0xff] %vm2387_vm1, %v1998_v48 }
 0x14b   :  { %v3258_v49 = vpop.f32.mrb[52].mxu0  ;;  %v3450_v50 = vpop.f32.mrb[52].mxu1 }
 0x14c   :  { %2441 = vst.msk [vmem:[%s5663_s2 + $0x1a8] sm:$0xff] %vm2387_vm1, %v3258_v49  ;;  %2569 = vst.msk [vmem:[%s5663_s2 + $0x5a8] sm:$0xff] %vm2387_vm1, %v3450_v50  ;;  %v1368_v51 = vpop.f32.mrb[53].mxu0  ;;  %v2008_v52 = vpop.f32.mrb[53].mxu1 }
 0x14d   :  { %2440 = vst.msk [vmem:[%s5663_s2 + $0x1a0] sm:$0xff] %vm2387_vm1, %v1368_v51  ;;  %2568 = vst.msk [vmem:[%s5663_s2 + $0x5a0] sm:$0xff] %vm2387_vm1, %v2008_v52 }
 0x14f   :  { %v3261_v53 = vpop.f32.mrb[54].mxu0  ;;  %v3453_v54 = vpop.f32.mrb[54].mxu1 }
 0x150   :  { %2443 = vst.msk [vmem:[%s5663_s2 + $0x1b8] sm:$0xff] %vm2387_vm1, %v3261_v53  ;;  %2571 = vst.msk [vmem:[%s5663_s2 + $0x5b8] sm:$0xff] %vm2387_vm1, %v3453_v54  ;;  %v1378_v55 = vpop.f32.mrb[55].mxu0  ;;  %v2018_v56 = vpop.f32.mrb[55].mxu1 }
 0x151   :  { %2442 = vst.msk [vmem:[%s5663_s2 + $0x1b0] sm:$0xff] %vm2387_vm1, %v1378_v55  ;;  %2570 = vst.msk [vmem:[%s5663_s2 + $0x5b0] sm:$0xff] %vm2387_vm1, %v2018_v56 }
 0x153   :  { %v3264_v57 = vpop.f32.mrb[56].mxu0  ;;  %v3456_v58 = vpop.f32.mrb[56].mxu1 }
 0x154   :  { %2445 = vst.msk [vmem:[%s5663_s2 + $0x1c8] sm:$0xff] %vm2387_vm1, %v3264_v57  ;;  %2573 = vst.msk [vmem:[%s5663_s2 + $0x5c8] sm:$0xff] %vm2387_vm1, %v3456_v58  ;;  %v1388_v59 = vpop.f32.mrb[57].mxu0  ;;  %v2028_v60 = vpop.f32.mrb[57].mxu1 }
 0x155   :  { %2444 = vst.msk [vmem:[%s5663_s2 + $0x1c0] sm:$0xff] %vm2387_vm1, %v1388_v59  ;;  %2572 = vst.msk [vmem:[%s5663_s2 + $0x5c0] sm:$0xff] %vm2387_vm1, %v2028_v60 }
 0x157   :  { %v3267_v61 = vpop.f32.mrb[58].mxu0  ;;  %v3459_v62 = vpop.f32.mrb[58].mxu1 }
 0x158   :  { %2447 = vst.msk [vmem:[%s5663_s2 + $0x1d8] sm:$0xff] %vm2387_vm1, %v3267_v61  ;;  %2575 = vst.msk [vmem:[%s5663_s2 + $0x5d8] sm:$0xff] %vm2387_vm1, %v3459_v62  ;;  %v1398_v63 = vpop.f32.mrb[59].mxu0  ;;  %v2038_v0 = vpop.f32.mrb[59].mxu1 }
 0x159   :  { %2446 = vst.msk [vmem:[%s5663_s2 + $0x1d0] sm:$0xff] %vm2387_vm1, %v1398_v63  ;;  %2574 = vst.msk [vmem:[%s5663_s2 + $0x5d0] sm:$0xff] %vm2387_vm1, %v2038_v0 }
 0x15b   :  { %v3270_v1 = vpop.f32.mrb[60].mxu0  ;;  %v3462_v2 = vpop.f32.mrb[60].mxu1 }
 0x15c   :  { %2449 = vst.msk [vmem:[%s5663_s2 + $0x1e8] sm:$0xff] %vm2387_vm1, %v3270_v1  ;;  %2577 = vst.msk [vmem:[%s5663_s2 + $0x5e8] sm:$0xff] %vm2387_vm1, %v3462_v2  ;;  %v1408_v3 = vpop.f32.mrb[61].mxu0  ;;  %v2048_v4 = vpop.f32.mrb[61].mxu1 }
 0x15d   :  { %2448 = vst.msk [vmem:[%s5663_s2 + $0x1e0] sm:$0xff] %vm2387_vm1, %v1408_v3  ;;  %2576 = vst.msk [vmem:[%s5663_s2 + $0x5e0] sm:$0xff] %vm2387_vm1, %v2048_v4 }
 0x15f   :  { %v3273_v5 = vpop.f32.mrb[62].mxu0  ;;  %v3465_v6 = vpop.f32.mrb[62].mxu1 }
 0x160   :  { %2451 = vst.msk [vmem:[%s5663_s2 + $0x1f8] sm:$0xff] %vm2387_vm1, %v3273_v5  ;;  %2579 = vst.msk [vmem:[%s5663_s2 + $0x5f8] sm:$0xff] %vm2387_vm1, %v3465_v6  ;;  %v1418_v7 = vpop.f32.mrb[63].mxu0  ;;  %v2058_v8 = vpop.f32.mrb[63].mxu1 }
 0x161   :  { %2450 = vst.msk [vmem:[%s5663_s2 + $0x1f0] sm:$0xff] %vm2387_vm1, %v1418_v7  ;;  %2578 = vst.msk [vmem:[%s5663_s2 + $0x5f0] sm:$0xff] %vm2387_vm1, %v2058_v8 }
 0x163   :  { %v3276_v9 = vpop.f32.mrb[64].mxu0  ;;  %v3468_v10 = vpop.f32.mrb[64].mxu1 }
 0x164   :  { %2453 = vst.msk [vmem:[%s5663_s2 + $0x208] sm:$0xff] %vm2387_vm1, %v3276_v9  ;;  %2581 = vst.msk [vmem:[%s5663_s2 + $0x608] sm:$0xff] %vm2387_vm1, %v3468_v10  ;;  %v1428_v11 = vpop.f32.mrb[65].mxu0  ;;  %v2068_v12 = vpop.f32.mrb[65].mxu1 }
 0x165   :  { %2452 = vst.msk [vmem:[%s5663_s2 + $0x200] sm:$0xff] %vm2387_vm1, %v1428_v11  ;;  %2580 = vst.msk [vmem:[%s5663_s2 + $0x600] sm:$0xff] %vm2387_vm1, %v2068_v12 }
 0x167   :  { %v3279_v13 = vpop.f32.mrb[66].mxu0  ;;  %v3471_v14 = vpop.f32.mrb[66].mxu1 }
 0x168   :  { %2455 = vst.msk [vmem:[%s5663_s2 + $0x218] sm:$0xff] %vm2387_vm1, %v3279_v13  ;;  %2583 = vst.msk [vmem:[%s5663_s2 + $0x618] sm:$0xff] %vm2387_vm1, %v3471_v14  ;;  %v1438_v15 = vpop.f32.mrb[67].mxu0  ;;  %v2078_v16 = vpop.f32.mrb[67].mxu1 }
 0x169   :  { %2454 = vst.msk [vmem:[%s5663_s2 + $0x210] sm:$0xff] %vm2387_vm1, %v1438_v15  ;;  %2582 = vst.msk [vmem:[%s5663_s2 + $0x610] sm:$0xff] %vm2387_vm1, %v2078_v16 }
 0x16b   :  { %v3282_v17 = vpop.f32.mrb[68].mxu0  ;;  %v3474_v18 = vpop.f32.mrb[68].mxu1 }
 0x16c   :  { %2457 = vst.msk [vmem:[%s5663_s2 + $0x228] sm:$0xff] %vm2387_vm1, %v3282_v17  ;;  %2585 = vst.msk [vmem:[%s5663_s2 + $0x628] sm:$0xff] %vm2387_vm1, %v3474_v18  ;;  %v1448_v19 = vpop.f32.mrb[69].mxu0  ;;  %v2088_v20 = vpop.f32.mrb[69].mxu1 }
 0x16d   :  { %2456 = vst.msk [vmem:[%s5663_s2 + $0x220] sm:$0xff] %vm2387_vm1, %v1448_v19  ;;  %2584 = vst.msk [vmem:[%s5663_s2 + $0x620] sm:$0xff] %vm2387_vm1, %v2088_v20 }
 0x16f   :  { %v3285_v21 = vpop.f32.mrb[70].mxu0  ;;  %v3477_v22 = vpop.f32.mrb[70].mxu1 }
 0x170   :  { %2459 = vst.msk [vmem:[%s5663_s2 + $0x238] sm:$0xff] %vm2387_vm1, %v3285_v21  ;;  %2587 = vst.msk [vmem:[%s5663_s2 + $0x638] sm:$0xff] %vm2387_vm1, %v3477_v22  ;;  %v1458_v23 = vpop.f32.mrb[71].mxu0  ;;  %v2098_v24 = vpop.f32.mrb[71].mxu1 }
 0x171   :  { %2458 = vst.msk [vmem:[%s5663_s2 + $0x230] sm:$0xff] %vm2387_vm1, %v1458_v23  ;;  %2586 = vst.msk [vmem:[%s5663_s2 + $0x630] sm:$0xff] %vm2387_vm1, %v2098_v24 }
 0x173   :  { %v3288_v25 = vpop.f32.mrb[72].mxu0  ;;  %v3480_v26 = vpop.f32.mrb[72].mxu1 }
 0x174   :  { %2461 = vst.msk [vmem:[%s5663_s2 + $0x248] sm:$0xff] %vm2387_vm1, %v3288_v25  ;;  %2589 = vst.msk [vmem:[%s5663_s2 + $0x648] sm:$0xff] %vm2387_vm1, %v3480_v26  ;;  %v1468_v27 = vpop.f32.mrb[73].mxu0  ;;  %v2108_v28 = vpop.f32.mrb[73].mxu1 }
 0x175   :  { %2460 = vst.msk [vmem:[%s5663_s2 + $0x240] sm:$0xff] %vm2387_vm1, %v1468_v27  ;;  %2588 = vst.msk [vmem:[%s5663_s2 + $0x640] sm:$0xff] %vm2387_vm1, %v2108_v28 }
 0x177   :  { %v3291_v29 = vpop.f32.mrb[74].mxu0  ;;  %v3483_v30 = vpop.f32.mrb[74].mxu1 }
 0x178   :  { %2463 = vst.msk [vmem:[%s5663_s2 + $0x258] sm:$0xff] %vm2387_vm1, %v3291_v29  ;;  %2591 = vst.msk [vmem:[%s5663_s2 + $0x658] sm:$0xff] %vm2387_vm1, %v3483_v30  ;;  %v1478_v31 = vpop.f32.mrb[75].mxu0  ;;  %v2118_v32 = vpop.f32.mrb[75].mxu1 }
 0x179   :  { %2462 = vst.msk [vmem:[%s5663_s2 + $0x250] sm:$0xff] %vm2387_vm1, %v1478_v31  ;;  %2590 = vst.msk [vmem:[%s5663_s2 + $0x650] sm:$0xff] %vm2387_vm1, %v2118_v32 }
 0x17b   :  { %v3294_v33 = vpop.f32.mrb[76].mxu0  ;;  %v3486_v34 = vpop.f32.mrb[76].mxu1 }
 0x17c   :  { %2465 = vst.msk [vmem:[%s5663_s2 + $0x268] sm:$0xff] %vm2387_vm1, %v3294_v33  ;;  %2593 = vst.msk [vmem:[%s5663_s2 + $0x668] sm:$0xff] %vm2387_vm1, %v3486_v34  ;;  %v1488_v35 = vpop.f32.mrb[77].mxu0  ;;  %v2128_v36 = vpop.f32.mrb[77].mxu1 }
 0x17d   :  { %2464 = vst.msk [vmem:[%s5663_s2 + $0x260] sm:$0xff] %vm2387_vm1, %v1488_v35  ;;  %2592 = vst.msk [vmem:[%s5663_s2 + $0x660] sm:$0xff] %vm2387_vm1, %v2128_v36 }
 0x17f   :  { %v3297_v37 = vpop.f32.mrb[78].mxu0  ;;  %v3489_v38 = vpop.f32.mrb[78].mxu1 }
 0x180   :  { %2467 = vst.msk [vmem:[%s5663_s2 + $0x278] sm:$0xff] %vm2387_vm1, %v3297_v37  ;;  %2595 = vst.msk [vmem:[%s5663_s2 + $0x678] sm:$0xff] %vm2387_vm1, %v3489_v38  ;;  %v1498_v39 = vpop.f32.mrb[79].mxu0  ;;  %v2138_v40 = vpop.f32.mrb[79].mxu1 }
 0x181   :  { %2466 = vst.msk [vmem:[%s5663_s2 + $0x270] sm:$0xff] %vm2387_vm1, %v1498_v39  ;;  %2594 = vst.msk [vmem:[%s5663_s2 + $0x670] sm:$0xff] %vm2387_vm1, %v2138_v40 }
 0x183   :  { %v3300_v41 = vpop.f32.mrb[80].mxu0  ;;  %v3492_v42 = vpop.f32.mrb[80].mxu1 }
 0x184   :  { %2469 = vst.msk [vmem:[%s5663_s2 + $0x288] sm:$0xff] %vm2387_vm1, %v3300_v41  ;;  %2597 = vst.msk [vmem:[%s5663_s2 + $0x688] sm:$0xff] %vm2387_vm1, %v3492_v42  ;;  %v1508_v43 = vpop.f32.mrb[81].mxu0  ;;  %v2148_v44 = vpop.f32.mrb[81].mxu1 }
 0x185   :  { %2468 = vst.msk [vmem:[%s5663_s2 + $0x280] sm:$0xff] %vm2387_vm1, %v1508_v43  ;;  %2596 = vst.msk [vmem:[%s5663_s2 + $0x680] sm:$0xff] %vm2387_vm1, %v2148_v44 }
 0x187   :  { %v3303_v45 = vpop.f32.mrb[82].mxu0  ;;  %v3495_v46 = vpop.f32.mrb[82].mxu1 }
 0x188   :  { %2471 = vst.msk [vmem:[%s5663_s2 + $0x298] sm:$0xff] %vm2387_vm1, %v3303_v45  ;;  %2599 = vst.msk [vmem:[%s5663_s2 + $0x698] sm:$0xff] %vm2387_vm1, %v3495_v46  ;;  %v1518_v47 = vpop.f32.mrb[83].mxu0  ;;  %v2158_v48 = vpop.f32.mrb[83].mxu1 }
 0x189   :  { %2470 = vst.msk [vmem:[%s5663_s2 + $0x290] sm:$0xff] %vm2387_vm1, %v1518_v47  ;;  %2598 = vst.msk [vmem:[%s5663_s2 + $0x690] sm:$0xff] %vm2387_vm1, %v2158_v48 }
 0x18b   :  { %v3306_v49 = vpop.f32.mrb[84].mxu0  ;;  %v3498_v50 = vpop.f32.mrb[84].mxu1 }
 0x18c   :  { %2473 = vst.msk [vmem:[%s5663_s2 + $0x2a8] sm:$0xff] %vm2387_vm1, %v3306_v49  ;;  %2601 = vst.msk [vmem:[%s5663_s2 + $0x6a8] sm:$0xff] %vm2387_vm1, %v3498_v50  ;;  %v1528_v51 = vpop.f32.mrb[85].mxu0  ;;  %v2168_v52 = vpop.f32.mrb[85].mxu1 }
 0x18d   :  { %2472 = vst.msk [vmem:[%s5663_s2 + $0x2a0] sm:$0xff] %vm2387_vm1, %v1528_v51  ;;  %2600 = vst.msk [vmem:[%s5663_s2 + $0x6a0] sm:$0xff] %vm2387_vm1, %v2168_v52 }
 0x18f   :  { %v3309_v53 = vpop.f32.mrb[86].mxu0  ;;  %v3501_v54 = vpop.f32.mrb[86].mxu1 }
 0x190   :  { %2475 = vst.msk [vmem:[%s5663_s2 + $0x2b8] sm:$0xff] %vm2387_vm1, %v3309_v53  ;;  %2603 = vst.msk [vmem:[%s5663_s2 + $0x6b8] sm:$0xff] %vm2387_vm1, %v3501_v54  ;;  %v1538_v55 = vpop.f32.mrb[87].mxu0  ;;  %v2178_v56 = vpop.f32.mrb[87].mxu1 }
 0x191   :  { %2474 = vst.msk [vmem:[%s5663_s2 + $0x2b0] sm:$0xff] %vm2387_vm1, %v1538_v55  ;;  %2602 = vst.msk [vmem:[%s5663_s2 + $0x6b0] sm:$0xff] %vm2387_vm1, %v2178_v56 }
 0x193   :  { %v3312_v57 = vpop.f32.mrb[88].mxu0  ;;  %v3504_v58 = vpop.f32.mrb[88].mxu1 }
 0x194   :  { %2477 = vst.msk [vmem:[%s5663_s2 + $0x2c8] sm:$0xff] %vm2387_vm1, %v3312_v57  ;;  %2605 = vst.msk [vmem:[%s5663_s2 + $0x6c8] sm:$0xff] %vm2387_vm1, %v3504_v58  ;;  %v1548_v59 = vpop.f32.mrb[89].mxu0  ;;  %v2188_v60 = vpop.f32.mrb[89].mxu1 }
 0x195   :  { %2476 = vst.msk [vmem:[%s5663_s2 + $0x2c0] sm:$0xff] %vm2387_vm1, %v1548_v59  ;;  %2604 = vst.msk [vmem:[%s5663_s2 + $0x6c0] sm:$0xff] %vm2387_vm1, %v2188_v60 }
 0x197   :  { %v3315_v61 = vpop.f32.mrb[90].mxu0  ;;  %v3507_v62 = vpop.f32.mrb[90].mxu1 }
 0x198   :  { %2479 = vst.msk [vmem:[%s5663_s2 + $0x2d8] sm:$0xff] %vm2387_vm1, %v3315_v61  ;;  %2607 = vst.msk [vmem:[%s5663_s2 + $0x6d8] sm:$0xff] %vm2387_vm1, %v3507_v62  ;;  %v1558_v63 = vpop.f32.mrb[91].mxu0  ;;  %v2198_v0 = vpop.f32.mrb[91].mxu1 }
 0x199   :  { %2478 = vst.msk [vmem:[%s5663_s2 + $0x2d0] sm:$0xff] %vm2387_vm1, %v1558_v63  ;;  %2606 = vst.msk [vmem:[%s5663_s2 + $0x6d0] sm:$0xff] %vm2387_vm1, %v2198_v0 }
 0x19b   :  { %v3318_v1 = vpop.f32.mrb[92].mxu0  ;;  %v3510_v2 = vpop.f32.mrb[92].mxu1 }
 0x19c   :  { %2481 = vst.msk [vmem:[%s5663_s2 + $0x2e8] sm:$0xff] %vm2387_vm1, %v3318_v1  ;;  %2609 = vst.msk [vmem:[%s5663_s2 + $0x6e8] sm:$0xff] %vm2387_vm1, %v3510_v2  ;;  %v1568_v3 = vpop.f32.mrb[93].mxu0  ;;  %v2208_v4 = vpop.f32.mrb[93].mxu1 }
 0x19d   :  { %2480 = vst.msk [vmem:[%s5663_s2 + $0x2e0] sm:$0xff] %vm2387_vm1, %v1568_v3  ;;  %2608 = vst.msk [vmem:[%s5663_s2 + $0x6e0] sm:$0xff] %vm2387_vm1, %v2208_v4 }
 0x19f   :  { %v3321_v5 = vpop.f32.mrb[94].mxu0  ;;  %v3513_v6 = vpop.f32.mrb[94].mxu1 }
 0x1a0   :  { %2483 = vst.msk [vmem:[%s5663_s2 + $0x2f8] sm:$0xff] %vm2387_vm1, %v3321_v5  ;;  %2611 = vst.msk [vmem:[%s5663_s2 + $0x6f8] sm:$0xff] %vm2387_vm1, %v3513_v6  ;;  %v1578_v7 = vpop.f32.mrb[95].mxu0  ;;  %v2218_v8 = vpop.f32.mrb[95].mxu1 }
 0x1a1   :  { %2482 = vst.msk [vmem:[%s5663_s2 + $0x2f0] sm:$0xff] %vm2387_vm1, %v1578_v7  ;;  %2610 = vst.msk [vmem:[%s5663_s2 + $0x6f0] sm:$0xff] %vm2387_vm1, %v2218_v8 }
 0x1a3   :  { %v3324_v9 = vpop.f32.mrb[96].mxu0  ;;  %v3516_v10 = vpop.f32.mrb[96].mxu1 }
 0x1a4   :  { %2485 = vst.msk [vmem:[%s5663_s2 + $0x308] sm:$0xff] %vm2387_vm1, %v3324_v9  ;;  %2613 = vst.msk [vmem:[%s5663_s2 + $0x708] sm:$0xff] %vm2387_vm1, %v3516_v10  ;;  %v1588_v11 = vpop.f32.mrb[97].mxu0  ;;  %v2228_v12 = vpop.f32.mrb[97].mxu1 }
 0x1a5   :  { %2484 = vst.msk [vmem:[%s5663_s2 + $0x300] sm:$0xff] %vm2387_vm1, %v1588_v11  ;;  %2612 = vst.msk [vmem:[%s5663_s2 + $0x700] sm:$0xff] %vm2387_vm1, %v2228_v12 }
 0x1a7   :  { %v3327_v13 = vpop.f32.mrb[98].mxu0  ;;  %v3519_v14 = vpop.f32.mrb[98].mxu1 }
 0x1a8   :  { %2487 = vst.msk [vmem:[%s5663_s2 + $0x318] sm:$0xff] %vm2387_vm1, %v3327_v13  ;;  %2615 = vst.msk [vmem:[%s5663_s2 + $0x718] sm:$0xff] %vm2387_vm1, %v3519_v14  ;;  %v1598_v15 = vpop.f32.mrb[99].mxu0  ;;  %v2238_v16 = vpop.f32.mrb[99].mxu1 }
 0x1a9   :  { %2486 = vst.msk [vmem:[%s5663_s2 + $0x310] sm:$0xff] %vm2387_vm1, %v1598_v15  ;;  %2614 = vst.msk [vmem:[%s5663_s2 + $0x710] sm:$0xff] %vm2387_vm1, %v2238_v16 }
 0x1ab   :  { %v3330_v17 = vpop.f32.mrb[100].mxu0  ;;  %v3522_v18 = vpop.f32.mrb[100].mxu1 }
 0x1ac   :  { %2489 = vst.msk [vmem:[%s5663_s2 + $0x328] sm:$0xff] %vm2387_vm1, %v3330_v17  ;;  %2617 = vst.msk [vmem:[%s5663_s2 + $0x728] sm:$0xff] %vm2387_vm1, %v3522_v18  ;;  %v1608_v19 = vpop.f32.mrb[101].mxu0  ;;  %v2248_v20 = vpop.f32.mrb[101].mxu1 }
 0x1ad   :  { %2488 = vst.msk [vmem:[%s5663_s2 + $0x320] sm:$0xff] %vm2387_vm1, %v1608_v19  ;;  %2616 = vst.msk [vmem:[%s5663_s2 + $0x720] sm:$0xff] %vm2387_vm1, %v2248_v20 }
 0x1af   :  { %v3333_v21 = vpop.f32.mrb[102].mxu0  ;;  %v3525_v22 = vpop.f32.mrb[102].mxu1 }
 0x1b0   :  { %2491 = vst.msk [vmem:[%s5663_s2 + $0x338] sm:$0xff] %vm2387_vm1, %v3333_v21  ;;  %2619 = vst.msk [vmem:[%s5663_s2 + $0x738] sm:$0xff] %vm2387_vm1, %v3525_v22  ;;  %v1618_v23 = vpop.f32.mrb[103].mxu0  ;;  %v2258_v24 = vpop.f32.mrb[103].mxu1 }
 0x1b1   :  { %2490 = vst.msk [vmem:[%s5663_s2 + $0x330] sm:$0xff] %vm2387_vm1, %v1618_v23  ;;  %2618 = vst.msk [vmem:[%s5663_s2 + $0x730] sm:$0xff] %vm2387_vm1, %v2258_v24 }
 0x1b3   :  { %v3336_v25 = vpop.f32.mrb[104].mxu0  ;;  %v3528_v26 = vpop.f32.mrb[104].mxu1 }
 0x1b4   :  { %2493 = vst.msk [vmem:[%s5663_s2 + $0x348] sm:$0xff] %vm2387_vm1, %v3336_v25  ;;  %2621 = vst.msk [vmem:[%s5663_s2 + $0x748] sm:$0xff] %vm2387_vm1, %v3528_v26  ;;  %v1628_v27 = vpop.f32.mrb[105].mxu0  ;;  %v2268_v28 = vpop.f32.mrb[105].mxu1 }
 0x1b5   :  { %2492 = vst.msk [vmem:[%s5663_s2 + $0x340] sm:$0xff] %vm2387_vm1, %v1628_v27  ;;  %2620 = vst.msk [vmem:[%s5663_s2 + $0x740] sm:$0xff] %vm2387_vm1, %v2268_v28 }
 0x1b7   :  { %v3339_v29 = vpop.f32.mrb[106].mxu0  ;;  %v3531_v30 = vpop.f32.mrb[106].mxu1 }
 0x1b8   :  { %2495 = vst.msk [vmem:[%s5663_s2 + $0x358] sm:$0xff] %vm2387_vm1, %v3339_v29  ;;  %2623 = vst.msk [vmem:[%s5663_s2 + $0x758] sm:$0xff] %vm2387_vm1, %v3531_v30  ;;  %v1638_v31 = vpop.f32.mrb[107].mxu0  ;;  %v2278_v32 = vpop.f32.mrb[107].mxu1 }
 0x1b9   :  { %2494 = vst.msk [vmem:[%s5663_s2 + $0x350] sm:$0xff] %vm2387_vm1, %v1638_v31  ;;  %2622 = vst.msk [vmem:[%s5663_s2 + $0x750] sm:$0xff] %vm2387_vm1, %v2278_v32 }
 0x1bb   :  { %v3342_v33 = vpop.f32.mrb[108].mxu0  ;;  %v3534_v34 = vpop.f32.mrb[108].mxu1 }
 0x1bc   :  { %2497 = vst.msk [vmem:[%s5663_s2 + $0x368] sm:$0xff] %vm2387_vm1, %v3342_v33  ;;  %2625 = vst.msk [vmem:[%s5663_s2 + $0x768] sm:$0xff] %vm2387_vm1, %v3534_v34  ;;  %v1648_v35 = vpop.f32.mrb[109].mxu0  ;;  %v2288_v36 = vpop.f32.mrb[109].mxu1 }
 0x1bd   :  { %2496 = vst.msk [vmem:[%s5663_s2 + $0x360] sm:$0xff] %vm2387_vm1, %v1648_v35  ;;  %2624 = vst.msk [vmem:[%s5663_s2 + $0x760] sm:$0xff] %vm2387_vm1, %v2288_v36 }
 0x1bf   :  { %v3345_v37 = vpop.f32.mrb[110].mxu0  ;;  %v3537_v38 = vpop.f32.mrb[110].mxu1 }
 0x1c0   :  { %2499 = vst.msk [vmem:[%s5663_s2 + $0x378] sm:$0xff] %vm2387_vm1, %v3345_v37  ;;  %2627 = vst.msk [vmem:[%s5663_s2 + $0x778] sm:$0xff] %vm2387_vm1, %v3537_v38  ;;  %v1658_v39 = vpop.f32.mrb[111].mxu0  ;;  %v2298_v40 = vpop.f32.mrb[111].mxu1 }
 0x1c1   :  { %2498 = vst.msk [vmem:[%s5663_s2 + $0x370] sm:$0xff] %vm2387_vm1, %v1658_v39  ;;  %2626 = vst.msk [vmem:[%s5663_s2 + $0x770] sm:$0xff] %vm2387_vm1, %v2298_v40 }
 0x1c3   :  { %v3348_v41 = vpop.f32.mrb[112].mxu0  ;;  %v3540_v42 = vpop.f32.mrb[112].mxu1 }
 0x1c4   :  { %2501 = vst.msk [vmem:[%s5663_s2 + $0x388] sm:$0xff] %vm2387_vm1, %v3348_v41  ;;  %2629 = vst.msk [vmem:[%s5663_s2 + $0x788] sm:$0xff] %vm2387_vm1, %v3540_v42  ;;  %v1668_v43 = vpop.f32.mrb[113].mxu0  ;;  %v2308_v44 = vpop.f32.mrb[113].mxu1 }
 0x1c5   :  { %2500 = vst.msk [vmem:[%s5663_s2 + $0x380] sm:$0xff] %vm2387_vm1, %v1668_v43  ;;  %2628 = vst.msk [vmem:[%s5663_s2 + $0x780] sm:$0xff] %vm2387_vm1, %v2308_v44 }
 0x1c7   :  { %v3351_v45 = vpop.f32.mrb[114].mxu0  ;;  %v3543_v46 = vpop.f32.mrb[114].mxu1 }
 0x1c8   :  { %2503 = vst.msk [vmem:[%s5663_s2 + $0x398] sm:$0xff] %vm2387_vm1, %v3351_v45  ;;  %2631 = vst.msk [vmem:[%s5663_s2 + $0x798] sm:$0xff] %vm2387_vm1, %v3543_v46  ;;  %v1678_v47 = vpop.f32.mrb[115].mxu0  ;;  %v2318_v48 = vpop.f32.mrb[115].mxu1 }
 0x1c9   :  { %2502 = vst.msk [vmem:[%s5663_s2 + $0x390] sm:$0xff] %vm2387_vm1, %v1678_v47  ;;  %2630 = vst.msk [vmem:[%s5663_s2 + $0x790] sm:$0xff] %vm2387_vm1, %v2318_v48 }
 0x1cb   :  { %v3354_v49 = vpop.f32.mrb[116].mxu0  ;;  %v3546_v50 = vpop.f32.mrb[116].mxu1 }
 0x1cc   :  { %2505 = vst.msk [vmem:[%s5663_s2 + $0x3a8] sm:$0xff] %vm2387_vm1, %v3354_v49  ;;  %2633 = vst.msk [vmem:[%s5663_s2 + $0x7a8] sm:$0xff] %vm2387_vm1, %v3546_v50  ;;  %v1688_v51 = vpop.f32.mrb[117].mxu0  ;;  %v2328_v52 = vpop.f32.mrb[117].mxu1 }
 0x1cd   :  { %2504 = vst.msk [vmem:[%s5663_s2 + $0x3a0] sm:$0xff] %vm2387_vm1, %v1688_v51  ;;  %2632 = vst.msk [vmem:[%s5663_s2 + $0x7a0] sm:$0xff] %vm2387_vm1, %v2328_v52 }
 0x1cf   :  { %v3357_v53 = vpop.f32.mrb[118].mxu0  ;;  %v3549_v54 = vpop.f32.mrb[118].mxu1 }
 0x1d0   :  { %2507 = vst.msk [vmem:[%s5663_s2 + $0x3b8] sm:$0xff] %vm2387_vm1, %v3357_v53  ;;  %2635 = vst.msk [vmem:[%s5663_s2 + $0x7b8] sm:$0xff] %vm2387_vm1, %v3549_v54  ;;  %v1698_v55 = vpop.f32.mrb[119].mxu0  ;;  %v2338_v56 = vpop.f32.mrb[119].mxu1 }
 0x1d1   :  { %2506 = vst.msk [vmem:[%s5663_s2 + $0x3b0] sm:$0xff] %vm2387_vm1, %v1698_v55  ;;  %2634 = vst.msk [vmem:[%s5663_s2 + $0x7b0] sm:$0xff] %vm2387_vm1, %v2338_v56 }
 0x1d3   :  { %v3360_v57 = vpop.f32.mrb[120].mxu0  ;;  %v3552_v58 = vpop.f32.mrb[120].mxu1 }
 0x1d4   :  { %2509 = vst.msk [vmem:[%s5663_s2 + $0x3c8] sm:$0xff] %vm2387_vm1, %v3360_v57  ;;  %2637 = vst.msk [vmem:[%s5663_s2 + $0x7c8] sm:$0xff] %vm2387_vm1, %v3552_v58  ;;  %v1708_v59 = vpop.f32.mrb[121].mxu0  ;;  %v2348_v60 = vpop.f32.mrb[121].mxu1 }
 0x1d5   :  { %2508 = vst.msk [vmem:[%s5663_s2 + $0x3c0] sm:$0xff] %vm2387_vm1, %v1708_v59  ;;  %2636 = vst.msk [vmem:[%s5663_s2 + $0x7c0] sm:$0xff] %vm2387_vm1, %v2348_v60 }
 0x1d7   :  { %v3363_v61 = vpop.f32.mrb[122].mxu0  ;;  %v3555_v62 = vpop.f32.mrb[122].mxu1 }
 0x1d8   :  { %2511 = vst.msk [vmem:[%s5663_s2 + $0x3d8] sm:$0xff] %vm2387_vm1, %v3363_v61  ;;  %2639 = vst.msk [vmem:[%s5663_s2 + $0x7d8] sm:$0xff] %vm2387_vm1, %v3555_v62  ;;  %v1718_v63 = vpop.f32.mrb[123].mxu0  ;;  %v2358_v0 = vpop.f32.mrb[123].mxu1 }
 0x1d9   :  { %2510 = vst.msk [vmem:[%s5663_s2 + $0x3d0] sm:$0xff] %vm2387_vm1, %v1718_v63  ;;  %2638 = vst.msk [vmem:[%s5663_s2 + $0x7d0] sm:$0xff] %vm2387_vm1, %v2358_v0 }
 0x1db   :  { %v3366_v1 = vpop.f32.mrb[124].mxu0  ;;  %v3558_v2 = vpop.f32.mrb[124].mxu1 }
 0x1dc   :  { %2513 = vst.msk [vmem:[%s5663_s2 + $0x3e8] sm:$0xff] %vm2387_vm1, %v3366_v1  ;;  %2641 = vst.msk [vmem:[%s5663_s2 + $0x7e8] sm:$0xff] %vm2387_vm1, %v3558_v2  ;;  %v1728_v3 = vpop.f32.mrb[125].mxu0  ;;  %v2368_v4 = vpop.f32.mrb[125].mxu1 }
 0x1dd   :  { %2512 = vst.msk [vmem:[%s5663_s2 + $0x3e0] sm:$0xff] %vm2387_vm1, %v1728_v3  ;;  %2640 = vst.msk [vmem:[%s5663_s2 + $0x7e0] sm:$0xff] %vm2387_vm1, %v2368_v4 }
 0x1df   :  { %v3369_v5 = vpop.f32.mrb[126].mxu0  ;;  %v3561_v6 = vpop.f32.mrb[126].mxu1 }
 0x1e0   :  { %2515 = vst.msk [vmem:[%s5663_s2 + $0x3f8] sm:$0xff] %vm2387_vm1, %v3369_v5  ;;  %2643 = vst.msk [vmem:[%s5663_s2 + $0x7f8] sm:$0xff] %vm2387_vm1, %v3561_v6  ;;  %v1738_v7 = vpop.f32.mrb[127].mxu0  ;;  %v2378_v8 = vpop.f32.mrb[127].mxu1 }
 0x1e1   :  { %2514 = vst.msk [vmem:[%s5663_s2 + $0x3f0] sm:$0xff] %vm2387_vm1, %v1738_v7  ;;  %2642 = vst.msk [vmem:[%s5663_s2 + $0x7f0] sm:$0xff] %vm2387_vm1, %v2378_v8 }

</bundles_post_ra>
